<compile_context>
chip_gen: v6e
topology: v6e:2x2x1
jax: 0.10.0
libtpu: 0.0.40
codegen_flags: <defaults>
</compile_context>

<pallas_src>
import jax
import jax.numpy as jnp
from jax.experimental import pallas as pl
from jax.experimental.pallas import tpu as pltpu

INPUT_SIZE = 784
HIDDEN_SIZE = 1010          # logical (PyTorch) hidden size
HIDDEN_PAD = 1024           # zero-padded hidden dim (numerically exact)
NUM_CLASSES = 10            # logical (PyTorch) output size
CLASSES_PAD = 128           # lane-dense padded output width (zero cols, sliced off)


def _round_up(x, m):
    return (x + m - 1) // m * m


def mlp_kernel(x_ref, w1_ref, b1_ref, w2_ref, b2_ref, o_ref):
    # f32 -> bf16 cast on the VPU (free: MXU is the binding slot). Avoids a
    # separate XLA convert pass over x in HBM.
    xb = x_ref[...].astype(jnp.bfloat16)
    # Layer 1: (tm, 784) bf16 @ (784, 1024) bf16 -> f32 accumulation on the MXU.
    h = jnp.dot(xb, w1_ref[...], preferred_element_type=jnp.float32)
    h = jnp.maximum(h + b1_ref[...], 0.0)                      # bias + ReLU in f32
    # Layer 2: (tm, 1024) bf16 @ (1024, 128) bf16 -> f32 accumulation.
    out = jnp.dot(h.astype(jnp.bfloat16), w2_ref[...],
                  preferred_element_type=jnp.float32)
    o_ref[...] = (out + b2_ref[...]).astype(o_ref.dtype)


def neural_net_forward(x, w1_p, b1_p, w2_p, b2_p, *, block_m=512):
    """Fused 784 -> 1024(zero-padded 1010) -> 128(zero-padded 10) MLP forward.

    x:    (B, 784)       f32  (cast to bf16 inside the kernel)
    w1_p: (784, 1024)    bf16 (PyTorch l1.weight.T, hidden cols zero-padded)
    b1_p: (1, 1024)      f32  (zero-padded)
    w2_p: (1024, 128)    bf16 (PyTorch l2.weight.T, hidden rows & class cols zero-padded)
    b2_p: (1, 128)       f32  (zero-padded)
    returns (B, 10) f32
    """
    B = x.shape[0]
    x = x.astype(jnp.float32)

    # Sublane-aligned batch tile, capped at block_m, chosen so there are >= 2
    # grid steps whenever B allows (v7x megacore: both TCs get batch tiles).
    tm = max(8, min(block_m, _round_up(pl.cdiv(B, 2), 8)))
    grid = (pl.cdiv(B, tm),)

    flops = 2 * B * (INPUT_SIZE * HIDDEN_PAD + HIDDEN_PAD * CLASSES_PAD)
    bytes_accessed = (x.size * 4 + w1_p.size * 2 + w2_p.size * 2
                      + b1_p.size * 4 + b2_p.size * 4 + B * CLASSES_PAD * 4)

    out = pl.pallas_call(
        mlp_kernel,
        out_shape=jax.ShapeDtypeStruct((B, CLASSES_PAD), jnp.float32),
        grid_spec=pltpu.PrefetchScalarGridSpec(
            num_scalar_prefetch=0,
            grid=grid,
            in_specs=[
                pl.BlockSpec((tm, INPUT_SIZE), lambda i: (i, 0)),            # x: batch tiled (f32)
                pl.BlockSpec((INPUT_SIZE, HIDDEN_PAD), lambda i: (0, 0)),    # w1: VMEM-resident
                pl.BlockSpec((1, HIDDEN_PAD), lambda i: (0, 0)),             # b1: resident
                pl.BlockSpec((HIDDEN_PAD, CLASSES_PAD), lambda i: (0, 0)),   # w2: resident
                pl.BlockSpec((1, CLASSES_PAD), lambda i: (0, 0)),            # b2: resident
            ],
            out_specs=pl.BlockSpec((tm, CLASSES_PAD), lambda i: (i, 0)),
        ),
        compiler_params=pltpu.CompilerParams(
            dimension_semantics=("parallel",),   # batch tiles split across TCs on v7x
            vmem_limit_bytes=32 << 20,
        ),
        cost_estimate=pl.CostEstimate(
            flops=flops, transcendentals=0, bytes_accessed=bytes_accessed),
    )(x, w1_p, b1_p, w2_p, b2_p)

    return out[:, :NUM_CLASSES]


def init_params(key):
    """Deterministic init mimicking nn.Linear (uniform(-1/sqrt(fan_in), 1/sqrt(fan_in)))."""
    k1, k2, k3, k4 = jax.random.split(key, 4)
    bound1 = 1.0 / (INPUT_SIZE ** 0.5)
    bound2 = 1.0 / (HIDDEN_SIZE ** 0.5)
    # Stored as (in_features, out_features) == PyTorch weight transposed.
    w1_t = jax.random.uniform(k1, (INPUT_SIZE, HIDDEN_SIZE), jnp.float32, -bound1, bound1)
    b1 = jax.random.uniform(k2, (1, HIDDEN_SIZE), jnp.float32, -bound1, bound1)
    w2_t = jax.random.uniform(k3, (HIDDEN_SIZE, NUM_CLASSES), jnp.float32, -bound2, bound2)
    b2 = jax.random.uniform(k4, (1, NUM_CLASSES), jnp.float32, -bound2, bound2)
    return w1_t, b1, w2_t, b2


def pack_params(w1_t, b1, w2_t, b2):
    """Zero-pad hidden 1010->1024 and classes 10->128 (both exact); bf16 matmul operands."""
    hpad = HIDDEN_PAD - HIDDEN_SIZE
    cpad = CLASSES_PAD - NUM_CLASSES
    w1_p = jnp.pad(w1_t, ((0, 0), (0, hpad))).astype(jnp.bfloat16)
    b1_p = jnp.pad(b1, ((0, 0), (0, hpad))).astype(jnp.float32)
    w2_p = jnp.pad(w2_t, ((0, hpad), (0, cpad))).astype(jnp.bfloat16)
    b2_p = jnp.pad(b2, ((0, 0), (0, cpad))).astype(jnp.float32)
    return w1_p, b1_p, w2_p, b2_p


def _reference(x, w1_t, b1, w2_t, b2):
    """Plain-JAX reference with the same bf16-input / f32-accum numerics."""
    hp = jax.lax.Precision.HIGHEST
    xb = x.astype(jnp.bfloat16).astype(jnp.float32)
    w1b = w1_t.astype(jnp.bfloat16).astype(jnp.float32)
    w2b = w2_t.astype(jnp.bfloat16).astype(jnp.float32)
    h = jnp.maximum(jnp.dot(xb, w1b, precision=hp) + b1, 0.0)
    h = h.astype(jnp.bfloat16).astype(jnp.float32)
    return jnp.dot(h, w2b, precision=hp) + b2


if __name__ == "__main__":
    key = jax.random.PRNGKey(0)
    pkey, xkey1, xkey2 = jax.random.split(key, 3)
    w1_t, b1, w2_t, b2 = init_params(pkey)
    w1_p, b1_p, w2_p, b2_p = pack_params(w1_t, b1, w2_t, b2)

    # Case 1: small batch, single grid step.
    x1 = jax.random.normal(xkey1, (8, INPUT_SIZE), jnp.float32)
    out1 = jax.block_until_ready(neural_net_forward(x1, w1_p, b1_p, w2_p, b2_p))
    ref1 = _reference(x1, w1_t, b1, w2_t, b2)
    assert out1.shape == (8, NUM_CLASSES)
    assert jnp.allclose(out1, ref1, atol=2e-2, rtol=2e-2)

    # Case 2: ragged batch over two grid steps (exercises the partial last block
    # without any jnp.pad / output-slice round trip).
    x2 = jax.random.normal(xkey2, (24, INPUT_SIZE), jnp.float32)
    out2 = jax.block_until_ready(
        neural_net_forward(x2, w1_p, b1_p, w2_p, b2_p, block_m=16))
    ref2 = _reference(x2, w1_t, b1, w2_t, b2)
    assert out2.shape == (24, NUM_CLASSES)
    assert jnp.allclose(out2, ref2, atol=2e-2, rtol=2e-2)

    print("KERNEL_OK")
</pallas_src>

<mosaic_0001>
module attributes {stable_mosaic.version = 11 : i64} {
  func.func @mlp_kernel(%arg0: i32, %arg1: memref<8x784xf32, #tpu.memory_space<vmem>>, %arg2: memref<784x1024xbf16, #tpu.memory_space<vmem>>, %arg3: memref<1x1024xf32, #tpu.memory_space<vmem>>, %arg4: memref<1024x128xbf16, #tpu.memory_space<vmem>>, %arg5: memref<1x128xf32, #tpu.memory_space<vmem>>, %arg6: memref<8x128xf32, #tpu.memory_space<vmem>>) attributes {dimension_semantics = [#tpu.dimension_semantics<parallel>], iteration_bounds = array<i64: 1>, scalar_prefetch = 0 : i64, scratch_operands = 0 : i64, tpu.core_type = #tpu.core_type<tc>, window_params = [{transform_indices = @transform_0, window_bounds = array<i64: 8, 784>}, {pipeline_mode = #tpu.pipeline_mode<synchronous>, transform_indices = @transform_1, window_bounds = array<i64: 784, 1024>}, {pipeline_mode = #tpu.pipeline_mode<synchronous>, transform_indices = @transform_2, window_bounds = array<i64: 1, 1024>}, {pipeline_mode = #tpu.pipeline_mode<synchronous>, transform_indices = @transform_3, window_bounds = array<i64: 1024, 128>}, {pipeline_mode = #tpu.pipeline_mode<synchronous>, transform_indices = @transform_4, window_bounds = array<i64: 1, 128>}, {transform_indices = @transform_5, window_bounds = array<i64: 8, 128>}]} {
    %c0 = arith.constant 0 : index
    %c0_0 = arith.constant 0 : index
    %0 = vector.load %arg1[%c0, %c0_0] : memref<8x784xf32, #tpu.memory_space<vmem>>, vector<8x784xf32>
    %1 = arith.truncf %0 : vector<8x784xf32> to vector<8x784xbf16>
    %c0_1 = arith.constant 0 : index
    %c0_2 = arith.constant 0 : index
    %2 = vector.load %arg2[%c0_1, %c0_2] : memref<784x1024xbf16, #tpu.memory_space<vmem>>, vector<784x1024xbf16>
    %cst = arith.constant dense<0.000000e+00> : vector<8x1024xf32>
    %3 = tpu.matmul %1, %2, %cst {dimension_numbers = #tpu.dot_dimension_numbers<[1], [0], [0], [1], [0, 0, 1, 1], [], []>} : vector<8x784xbf16>, vector<784x1024xbf16>, vector<8x1024xf32> -> vector<8x1024xf32>
    %c0_3 = arith.constant 0 : index
    %c0_4 = arith.constant 0 : index
    %4 = vector.load %arg3[%c0_3, %c0_4] : memref<1x1024xf32, #tpu.memory_space<vmem>>, vector<1x1024xf32>
    %5 = vector.broadcast %4 : vector<1x1024xf32> to vector<8x1024xf32>
    %6 = arith.addf %3, %5 : vector<8x1024xf32>
    %cst_5 = arith.constant 0.000000e+00 : f32
    %7 = vector.broadcast %cst_5 : f32 to vector<8x1024xf32>
    %8 = arith.maximumf %6, %7 : vector<8x1024xf32>
    %9 = arith.truncf %8 : vector<8x1024xf32> to vector<8x1024xbf16>
    %c0_6 = arith.constant 0 : index
    %c0_7 = arith.constant 0 : index
    %10 = vector.load %arg4[%c0_6, %c0_7] : memref<1024x128xbf16, #tpu.memory_space<vmem>>, vector<1024x128xbf16>
    %cst_8 = arith.constant dense<0.000000e+00> : vector<8x128xf32>
    %11 = tpu.matmul %9, %10, %cst_8 {dimension_numbers = #tpu.dot_dimension_numbers<[1], [0], [0], [1], [0, 0, 1, 1], [], []>} : vector<8x1024xbf16>, vector<1024x128xbf16>, vector<8x128xf32> -> vector<8x128xf32>
    %c0_9 = arith.constant 0 : index
    %c0_10 = arith.constant 0 : index
    %12 = vector.load %arg5[%c0_9, %c0_10] : memref<1x128xf32, #tpu.memory_space<vmem>>, vector<1x128xf32>
    %13 = vector.broadcast %12 : vector<1x128xf32> to vector<8x128xf32>
    %14 = arith.addf %11, %13 : vector<8x128xf32>
    %c0_11 = arith.constant 0 : index
    %c0_12 = arith.constant 0 : index
    %15 = vector.load %arg6[%c0_11, %c0_12] : memref<8x128xf32, #tpu.memory_space<vmem>>, vector<8x128xf32>
    tpu.vector_store %arg6[%c0_11, %c0_12], %14 {strides = array<i32>} : memref<8x128xf32, #tpu.memory_space<vmem>>, vector<8x128xf32>,
    return
  }
  func.func @transform_0(%arg0: i32) -> (i32, i32) {
    %c0_i32 = arith.constant 0 : i32
    %c0_i32_0 = arith.constant 0 : i32
    return %arg0, %c0_i32 : i32, i32
  }
  func.func @transform_1(%arg0: i32) -> (i32, i32) {
    %c0_i32 = arith.constant 0 : i32
    %c0_i32_0 = arith.constant 0 : i32
    %c0_i32_1 = arith.constant 0 : i32
    return %c0_i32, %c0_i32_0 : i32, i32
  }
  func.func @transform_2(%arg0: i32) -> (i32, i32) {
    %c0_i32 = arith.constant 0 : i32
    %c0_i32_0 = arith.constant 0 : i32
    %c0_i32_1 = arith.constant 0 : i32
    return %c0_i32, %c0_i32_0 : i32, i32
  }
  func.func @transform_3(%arg0: i32) -> (i32, i32) {
    %c0_i32 = arith.constant 0 : i32
    %c0_i32_0 = arith.constant 0 : i32
    %c0_i32_1 = arith.constant 0 : i32
    return %c0_i32, %c0_i32_0 : i32, i32
  }
  func.func @transform_4(%arg0: i32) -> (i32, i32) {
    %c0_i32 = arith.constant 0 : i32
    %c0_i32_0 = arith.constant 0 : i32
    %c0_i32_1 = arith.constant 0 : i32
    return %c0_i32, %c0_i32_0 : i32, i32
  }
  func.func @transform_5(%arg0: i32) -> (i32, i32) {
    %c0_i32 = arith.constant 0 : i32
    %c0_i32_0 = arith.constant 0 : i32
    return %arg0, %c0_i32 : i32, i32
  }
}

</mosaic_0001>

<bundles_post_ra>
// kernel: tpu_custom_call.1
= control target key start
LH: loop header
LB: loop body
LE: loop exit
PB: predicated region body
PF: predicated region fallthrough
CT: control target
= control target key end

     0   :  { %10 = vsyncpa [#allocation3], 0  ;;  %s4782_s0 = inlined_call_operand.hbm [shape: f32[8,784], index: 0, kind: input, shape index: {}]   ;;  %s4783_s1 = inlined_call_operand.hbm [shape: bf16[784,1024], index: 1, kind: input, shape index: {}]   ;;  %s4784_s2 = inlined_call_operand.hbm [shape: f32[1,1024], index: 2, kind: input, shape index: {}]   ;;  %s4785_s3 = inlined_call_operand.hbm [shape: bf16[1024,128], index: 3, kind: input, shape index: {}]   ;;  %s4786_s4 = inlined_call_operand.hbm [shape: f32[1,128], index: 4, kind: input, shape index: {}]   ;;  %s4787_s5 = inlined_call_operand.hbm [shape: f32[8,128], index: 5, kind: output, shape index: {}]  }
   0x1   :  { %11 = vsyncpa [#allocation6], 0 }
   0x2   :  { %12 = vsyncpa [#allocation9], 0 }
   0x3   :  { %13 = vsyncpa [#allocation4], 0  ;;  %s4618_s18 = smov [#allocation5]  }
   0x4   :  { %s29_s19 = sshll.u32 %s4618_s18, 4  ;;  %s30_s19 = int_to_ptr.vmem [resolvable:$true] %s29_s19 }
   0x5   :  { %s4498_s20 = scalar_lea.vmem %s30_s19, 50176  ;;  %p4503_p1 = scmp.lt.s32.totalorder %s30_s19, %s30_s19 }
   0x6   :  { %p4499_p0 = scmp.ne.s32.totalorder %s30_s19, %s4498_s20  ;;  %p4504_p2 = scmp.lt.s32.totalorder %s4498_s20, %s4498_s20 }
   0x8   :  { %p4505_p3 = por %p4504_p2, %p4503_p1 }
   0xa   :  { %p4506_p4 = pnand %p4505_p3, %p4499_p0 }
   0xc   :  { %4509 = shalt.err (!%p4506_p4)
}
   0xd   :  { %s4619_s21 = smov 512   ;;  %s4620_s22 = smov 32  }
   0xe   :  { %35 = dma.hbm_to_vmem [thread:$0]  %s4783_s1, 50176, %s30_s19, [#allocation6], %s4619_s21, %s4619_s21, %s4620_s22  }
   0xf   :  { %s4621_s25 = smov [#allocation8]  }
  0x10   :  { %s51_s26 = sshll.u32 %s4621_s25, 4  ;;  %s52_s26 = int_to_ptr.vmem [resolvable:$true] %s51_s26 }
  0x11   :  { %s4518_s27 = scalar_lea.vmem %s52_s26, 8192  ;;  %p4523_p6 = scmp.lt.s32.totalorder %s52_s26, %s52_s26 }
  0x12   :  { %p4519_p5 = scmp.ne.s32.totalorder %s52_s26, %s4518_s27  ;;  %p4524_p7 = scmp.lt.s32.totalorder %s4518_s27, %s4518_s27 }
  0x14   :  { %p4525_p8 = por %p4524_p7, %p4523_p6 }
  0x16   :  { %p4526_p9 = pnand %p4525_p8, %p4519_p5 }
  0x18   :  { %4529 = shalt.err (!%p4526_p9)
}
  0x19   :  { %s4622_s28 = smov 64   ;;  %s4623_s29 = smov 4  }
  0x1a   :  { %57 = dma.hbm_to_vmem [thread:$0]  %s4785_s3, 8192, %s52_s26, [#allocation9], %s4622_s28, %s4622_s28, %s4623_s29  }
  0x1b   :  { %s4624_s7 = smov [#allocation2]   ;;  %s4625_s9 = smov [#allocation7]  }
  0x1c   :  { %s20_s8 = sshll.u32 %s4624_s7, 4  ;;  %s42_s1 = sshll.u32 %s4625_s9, 4  ;;  %s21_s8 = int_to_ptr.vmem [resolvable:$true] %s20_s8  ;;  %s43_s1 = int_to_ptr.vmem [resolvable:$true] %s42_s1 }
  0x1d   :  { %s4538_s10 = scalar_lea.vmem %s21_s8, 896  ;;  %p4543_p11 = scmp.lt.s32.totalorder %s21_s8, %s21_s8 }
  0x1e   :  { %p4539_p10 = scmp.ne.s32.totalorder %s21_s8, %s4538_s10  ;;  %p4544_p12 = scmp.lt.s32.totalorder %s4538_s10, %s4538_s10 }
  0x20   :  { %p4545_p13 = por %p4544_p12, %p4543_p11 }
  0x22   :  { %p4546_p0 = pnand %p4545_p13, %p4539_p10 }
  0x24   :  { %4549 = shalt.err (!%p4546_p0)
}
  0x25   :  { %23 = dma.hbm_to_vmem [thread:$0]  %s4782_s0, 896, %s21_s8, [#allocation3]  }
  0x26   :  { %s4558_s13 = scalar_lea.vmem %s43_s1, 128  ;;  %p4563_p2 = scmp.lt.s32.totalorder %s43_s1, %s43_s1 }
  0x27   :  { %p4559_p1 = scmp.ne.s32.totalorder %s43_s1, %s4558_s13  ;;  %p4564_p3 = scmp.lt.s32.totalorder %s4558_s13, %s4558_s13 }
  0x29   :  { %p4565_p4 = por %p4564_p3, %p4563_p2 }
  0x2b   :  { %p4566_p5 = pnand %p4565_p4, %p4559_p1 }
  0x2d   :  { %4569 = shalt.err (!%p4566_p5)
}
  0x2e   :  { %45 = dma.hbm_to_vmem [thread:$0]  %s4784_s2, 128, %s43_s1, [#allocation6]  }
  0x2f   :  { %s4626_s15 = smov [#allocation10]  }
  0x30   :  { %s64_s16 = sshll.u32 %s4626_s15, 4  ;;  %s65_s16 = int_to_ptr.vmem [resolvable:$true] %s64_s16 }
  0x31   :  { %s4578_s17 = scalar_lea.vmem %s65_s16, 16  ;;  %s4582_s18 = scalar_lea.vmem %s65_s16, 32 }
  0x32   :  { %p4579_p6 = scmp.ne.s32.totalorder %s65_s16, %s4578_s17  ;;  %p4583_p7 = scmp.lt.s32.totalorder %s65_s16, %s65_s16 }
  0x33   :  { %p4584_p8 = scmp.lt.s32.totalorder %s4582_s18, %s4578_s17 }
  0x35   :  { %p4585_p9 = por %p4584_p8, %p4583_p7 }
  0x37   :  { %p4586_p10 = pnand %p4585_p9, %p4579_p6 }
  0x39   :  { %4589 = shalt.err (!%p4586_p10)
}
  0x3a   :  { %67 = dma.hbm_to_vmem [thread:$0]  %s4786_s4, 16, %s65_s16, [#allocation9]  }
  0x3b   :  { %4610 = dma.done.wait [#allocation3], 896  }
  0x3c   :  { %4611 = vsyncadd [#allocation3], 4294966400 }
  0x3d   :  { %4612 = dma.done.wait [#allocation6], 50304  }
  0x3e   :  { %4613 = vsyncadd [#allocation6], 4294916992 }
  0x3f   :  { %4614 = dma.done.wait [#allocation9], 8208  }
  0x40   :  { %4615 = vsyncadd [#allocation9], 4294959088  ;;  %v154_v0 = vld [vmem:[#allocation5 + $0x1c0] sm:$0xff]  ;;  %v85_v53 = vld [vmem:[#allocation2 + $0x8] sm:$0xff]  ;;  %vm2492_vm0 = vcmask 130048   ;;  %s4628_s2 = smov [#allocation11]  }
  0x41   :  { %v158_v1 = vld [vmem:[#allocation5 + $0x1e0] sm:$0xff]  ;;  %v4674_v58 = vpack.c.bf16 %v85_v53, %v85_v53  ;;  %s3854_s4 = sshll.u32 %s4628_s2, 4  ;;  %s3855_s4 = int_to_ptr.vmem [resolvable:$true] %s3854_s4 }
  0x42   :  { %v282_v2 = vld [vmem:[#allocation5 + $0x5c0] sm:$0xff]  ;;  %v3922_v3 = vcombine.high %v154_v0, %v158_v1  ;;  %v3921_v5 = vcombine.low %v154_v0, %v158_v1  ;;  %s4590_s20 = scalar_lea.vmem %s3855_s4, 128  ;;  %p4595_p12 = scmp.lt.s32.totalorder %s3855_s4, %s3855_s4 }
  0x43   :  { %v286_v4 = vld [vmem:[#allocation5 + $0x5e0] sm:$0xff]  ;;  %2528 = vmatprep.mubr.bf16.mxu0 %v4674_v58  ;;  %p4591_p11 = scmp.ne.s32.totalorder %s3855_s4, %s4590_s20  ;;  %p4596_p13 = scmp.lt.s32.totalorder %s4590_s20, %s4590_s20 }
  0x44   :  { %v146_v6 = vld [vmem:[#allocation5 + $0x180] sm:$0xff]  ;;  %v4050_v8 = vcombine.high %v282_v2, %v286_v4  ;;  %v4049_v9 = vcombine.low %v282_v2, %v286_v4  ;;  %2496 = vmatprep.subr.bf16.mxu0 %v3922_v3 }
  0x45   :  { %v150_v7 = vld [vmem:[#allocation5 + $0x1a0] sm:$0xff]  ;;  %2497 = vmatpush1.bf16.msra.mxu0 %v3921_v5  ;;  %p4597_p0 = por %p4596_p13, %p4595_p12 }
  0x46   :  { %v3914_v10 = vcombine.high %v146_v6, %v150_v7  ;;  %v274_v11 = vld [vmem:[#allocation5 + $0x580] sm:$0xff]  ;;  %2537 = vmatprep.subr.bf16.mxu1 %v4050_v8  ;;  %v3913_v18 = vcombine.low %v146_v6, %v150_v7 }
  0x47   :  { %v278_v12 = vld [vmem:[#allocation5 + $0x5a0] sm:$0xff]  ;;  %2538 = vmatpush1.bf16.msra.mxu1 %v4049_v9  ;;  %p4598_p1 = pnand %p4597_p0, %p4591_p11 }
  0x48   :  { %v138_v13 = vld [vmem:[#allocation5 + $0x140] sm:$0xff]  ;;  %v4042_v14 = vcombine.high %v274_v11, %v278_v12  ;;  %2498 = vmatprep.subr.bf16.mxu0 %v3914_v10  ;;  %v4041_v19 = vcombine.low %v274_v11, %v278_v12 }
  0x49   :  { %v142_v15 = vld [vmem:[#allocation5 + $0x160] sm:$0xff]  ;;  %2499 = vmatpush1.bf16.msra.mxu0 %v3913_v18 }
  0x4a   :  { %v266_v16 = vld [vmem:[#allocation5 + $0x540] sm:$0xff]  ;;  %v3906_v20 = vcombine.high %v138_v13, %v142_v15  ;;  %2539 = vmatprep.subr.bf16.mxu1 %v4042_v14  ;;  %v3905_v26 = vcombine.low %v138_v13, %v142_v15 }
  0x4b   :  { %v270_v17 = vld [vmem:[#allocation5 + $0x560] sm:$0xff]  ;;  %2540 = vmatpush1.bf16.msra.mxu1 %v4041_v19 }
  0x4c   :  { %v4034_v21 = vcombine.high %v266_v16, %v270_v17  ;;  %v130_v22 = vld [vmem:[#allocation5 + $0x100] sm:$0xff]  ;;  %2500 = vmatprep.subr.bf16.mxu0 %v3906_v20  ;;  %v4033_v27 = vcombine.low %v266_v16, %v270_v17 }
  0x4d   :  { %v134_v23 = vld [vmem:[#allocation5 + $0x120] sm:$0xff]  ;;  %2501 = vmatpush1.bf16.msra.mxu0 %v3905_v26 }
  0x4e   :  { %v258_v24 = vld [vmem:[#allocation5 + $0x500] sm:$0xff]  ;;  %v3898_v28 = vcombine.high %v130_v22, %v134_v23  ;;  %2541 = vmatprep.subr.bf16.mxu1 %v4034_v21  ;;  %v3897_v34 = vcombine.low %v130_v22, %v134_v23 }
  0x4f   :  { %v262_v25 = vld [vmem:[#allocation5 + $0x520] sm:$0xff]  ;;  %2542 = vmatpush1.bf16.msra.mxu1 %v4033_v27 }
  0x50   :  { %v4026_v29 = vcombine.high %v258_v24, %v262_v25  ;;  %v122_v30 = vld [vmem:[#allocation5 + $0xc0] sm:$0xff]  ;;  %2502 = vmatprep.subr.bf16.mxu0 %v3898_v28  ;;  %v4025_v35 = vcombine.low %v258_v24, %v262_v25 }
  0x51   :  { %v126_v31 = vld [vmem:[#allocation5 + $0xe0] sm:$0xff]  ;;  %2503 = vmatpush1.bf16.msra.mxu0 %v3897_v34 }
  0x52   :  { %v250_v32 = vld [vmem:[#allocation5 + $0x4c0] sm:$0xff]  ;;  %v3890_v36 = vcombine.high %v122_v30, %v126_v31  ;;  %2543 = vmatprep.subr.bf16.mxu1 %v4026_v29  ;;  %v3889_v42 = vcombine.low %v122_v30, %v126_v31 }
  0x53   :  { %v254_v33 = vld [vmem:[#allocation5 + $0x4e0] sm:$0xff]  ;;  %2544 = vmatpush1.bf16.msra.mxu1 %v4025_v35 }
  0x54   :  { %v4018_v37 = vcombine.high %v250_v32, %v254_v33  ;;  %v114_v38 = vld [vmem:[#allocation5 + $0x80] sm:$0xff]  ;;  %2504 = vmatprep.subr.bf16.mxu0 %v3890_v36  ;;  %v4017_v43 = vcombine.low %v250_v32, %v254_v33 }
  0x55   :  { %v118_v39 = vld [vmem:[#allocation5 + $0xa0] sm:$0xff]  ;;  %2505 = vmatpush1.bf16.msra.mxu0 %v3889_v42 }
  0x56   :  { %v242_v40 = vld [vmem:[#allocation5 + $0x480] sm:$0xff]  ;;  %v3882_v44 = vcombine.high %v114_v38, %v118_v39  ;;  %2545 = vmatprep.subr.bf16.mxu1 %v4018_v37  ;;  %v3881_v50 = vcombine.low %v114_v38, %v118_v39 }
  0x57   :  { %v246_v41 = vld [vmem:[#allocation5 + $0x4a0] sm:$0xff]  ;;  %2546 = vmatpush1.bf16.msra.mxu1 %v4017_v43 }
  0x58   :  { %v4010_v45 = vcombine.high %v242_v40, %v246_v41  ;;  %v106_v46 = vld [vmem:[#allocation5 + $0x40] sm:$0xff]  ;;  %2506 = vmatprep.subr.bf16.mxu0 %v3882_v44  ;;  %v4009_v51 = vcombine.low %v242_v40, %v246_v41 }
  0x59   :  { %v110_v47 = vld [vmem:[#allocation5 + $0x60] sm:$0xff]  ;;  %2507 = vmatpush1.bf16.msra.mxu0 %v3881_v50 }
  0x5a   :  { %v234_v48 = vld [vmem:[#allocation5 + $0x440] sm:$0xff]  ;;  %v3874_v52 = vcombine.high %v106_v46, %v110_v47  ;;  %2547 = vmatprep.subr.bf16.mxu1 %v4010_v45  ;;  %v3873_v62 = vcombine.low %v106_v46, %v110_v47 }
  0x5b   :  { %v238_v49 = vld [vmem:[#allocation5 + $0x460] sm:$0xff]  ;;  %2548 = vmatpush1.bf16.msra.mxu1 %v4009_v51 }
  0x5c   :  { %v87_v54 = vld [vmem:[#allocation2 + $0x18] sm:$0xff]  ;;  %v4002_v55 = vcombine.high %v234_v48, %v238_v49  ;;  %2508 = vmatprep.subr.bf16.mxu0 %v3874_v52  ;;  %v4001_v63 = vcombine.low %v234_v48, %v238_v49 }
  0x5d   :  { %v98_v56 = vld [vmem:[#allocation5] sm:$0xff]  ;;  %v4676_v59 = vpack.c.bf16 %v87_v54, %v87_v54  ;;  %2509 = vmatpush1.bf16.msra.mxu0 %v3873_v62 }
  0x5e   :  { %v102_v57 = vld [vmem:[#allocation5 + $0x20] sm:$0xff]  ;;  %2549 = vmatprep.subr.bf16.mxu1 %v4002_v55 }
  0x5f   :  { %v226_v60 = vld [vmem:[#allocation5 + $0x400] sm:$0xff]  ;;  %v3866_v0 = vcombine.high %v98_v56, %v102_v57  ;;  %2569 = vmatprep.mubr.bf16.mxu1 %v4676_v59  ;;  %v3865_v6 = vcombine.low %v98_v56, %v102_v57  ;;  %2550 = vmatpush1.bf16.msra.mxu1 %v4001_v63 }
  0x60   :  { %v230_v61 = vld [vmem:[#allocation5 + $0x420] sm:$0xff] }
  0x61   :  { %v3994_v1 = vcombine.high %v226_v60, %v230_v61  ;;  %v218_v2 = vld [vmem:[#allocation5 + $0x3c0] sm:$0xff]  ;;  %2510 = vmatprep.subr.bf16.mxu0 %v3866_v0  ;;  %v3993_v7 = vcombine.low %v226_v60, %v230_v61 }
  0x62   :  { %v222_v3 = vld [vmem:[#allocation5 + $0x3e0] sm:$0xff]  ;;  %2511 = vmatpush1.bf16.msra.mxu0 %v3865_v6 }
  0x63   :  { %v346_v4 = vld [vmem:[#allocation5 + $0x7c0] sm:$0xff]  ;;  %v3986_v8 = vcombine.high %v218_v2, %v222_v3  ;;  %2551 = vmatprep.subr.bf16.mxu1 %v3994_v1  ;;  %v3985_v14 = vcombine.low %v218_v2, %v222_v3 }
  0x64   :  { %v350_v5 = vld [vmem:[#allocation5 + $0x7e0] sm:$0xff]  ;;  %2552 = vmatpush1.bf16.msra.mxu1 %v3993_v7 }
  0x65   :  { %v4114_v9 = vcombine.high %v346_v4, %v350_v5  ;;  %v210_v10 = vld [vmem:[#allocation5 + $0x380] sm:$0xff]  ;;  %2512 = vmatprep.subr.bf16.mxu0 %v3986_v8  ;;  %v4113_v15 = vcombine.low %v346_v4, %v350_v5 }
  0x66   :  { %v214_v11 = vld [vmem:[#allocation5 + $0x3a0] sm:$0xff]  ;;  %2513 = vmatpush2.bf16.msra.mxu0 %v3985_v14 }
  0x67   :  { %v338_v12 = vld [vmem:[#allocation5 + $0x780] sm:$0xff]  ;;  %v3978_v16 = vcombine.high %v210_v10, %v214_v11  ;;  %2553 = vmatprep.subr.bf16.mxu1 %v4114_v9  ;;  %v3977_v22 = vcombine.low %v210_v10, %v214_v11  ;;  %v84_v9 = vld [vmem:[#allocation2] sm:$0xff]  ;;  %v86_v11 = vld [vmem:[#allocation2 + $0x10] sm:$0xff] }
  0x68   :  { %v342_v13 = vld [vmem:[#allocation5 + $0x7a0] sm:$0xff]  ;;  %2554 = vmatpush2.bf16.msra.mxu1 %v4113_v15 }
  0x69   :  { %v4106_v17 = vcombine.high %v338_v12, %v342_v13  ;;  %v202_v18 = vld [vmem:[#allocation5 + $0x340] sm:$0xff]  ;;  %2514 = vmatprep.subr.bf16.mxu0 %v3978_v16  ;;  %v4105_v23 = vcombine.low %v338_v12, %v342_v13  ;;  %v4680_v16 = vpack.c.bf16 %v84_v9, %v84_v9 }
  0x6a   :  { %v206_v19 = vld [vmem:[#allocation5 + $0x360] sm:$0xff]  ;;  %2515 = vmatpush2.bf16.msra.mxu0 %v3977_v22 }
  0x6b   :  { %v330_v20 = vld [vmem:[#allocation5 + $0x740] sm:$0xff]  ;;  %v3970_v24 = vcombine.high %v202_v18, %v206_v19  ;;  %2555 = vmatprep.subr.bf16.mxu1 %v4106_v17  ;;  %v3969_v30 = vcombine.low %v202_v18, %v206_v19  ;;  %v155_v17 = vld [vmem:[#allocation5 + $0x1c8] sm:$0xff]  ;;  %v4682_v19 = vpack.c.bf16 %v86_v11, %v86_v11 }
  0x6c   :  { %v334_v21 = vld [vmem:[#allocation5 + $0x760] sm:$0xff]  ;;  %2556 = vmatpush2.bf16.msra.mxu1 %v4105_v23  ;;  %v159_v18 = vld [vmem:[#allocation5 + $0x1e8] sm:$0xff] }
  0x6d   :  { %v4098_v25 = vcombine.high %v330_v20, %v334_v21  ;;  %v194_v26 = vld [vmem:[#allocation5 + $0x300] sm:$0xff]  ;;  %2516 = vmatprep.subr.bf16.mxu0 %v3970_v24  ;;  %v4097_v31 = vcombine.low %v330_v20, %v334_v21  ;;  %v89_v21 = vld [vmem:[#allocation2 + $0x28] sm:$0xff]  ;;  %v111_v11 = vld [vmem:[#allocation5 + $0x68] sm:$0xff] }
  0x6e   :  { %v198_v27 = vld [vmem:[#allocation5 + $0x320] sm:$0xff]  ;;  %2517 = vmatpush2.bf16.msra.mxu0 %v3969_v30 }
  0x6f   :  { %v322_v28 = vld [vmem:[#allocation5 + $0x700] sm:$0xff]  ;;  %v3962_v32 = vcombine.high %v194_v26, %v198_v27  ;;  %2557 = vmatprep.subr.bf16.mxu1 %v4098_v25  ;;  %v3961_v38 = vcombine.low %v194_v26, %v198_v27  ;;  %v3924_v25 = vcombine.high %v155_v17, %v159_v18  ;;  %v90_v27 = vld [vmem:[#allocation2 + $0x30] sm:$0xff] }
  0x70   :  { %v326_v29 = vld [vmem:[#allocation5 + $0x720] sm:$0xff]  ;;  %2558 = vmatpush2.bf16.msra.mxu1 %v4097_v31  ;;  %v147_v31 = vld [vmem:[#allocation5 + $0x188] sm:$0xff] }
  0x71   :  { %v4090_v33 = vcombine.high %v322_v28, %v326_v29  ;;  %v186_v34 = vld [vmem:[#allocation5 + $0x2c0] sm:$0xff]  ;;  %2518 = vmatprep.subr.bf16.mxu0 %v3962_v32  ;;  %v4089_v39 = vcombine.low %v322_v28, %v326_v29  ;;  %v4685_v28 = vpack.c.bf16 %v89_v21, %v89_v21  ;;  %v151_v32 = vld [vmem:[#allocation5 + $0x1a8] sm:$0xff] }
  0x72   :  { %v190_v35 = vld [vmem:[#allocation5 + $0x2e0] sm:$0xff]  ;;  %2519 = vmatpush2.bf16.msra.mxu0 %v3961_v38  ;;  %v3923_v38 = vcombine.low %v155_v17, %v159_v18  ;;  %v103_v21 = vld [vmem:[#allocation5 + $0x28] sm:$0xff] }
  0x73   :  { %v314_v36 = vld [vmem:[#allocation5 + $0x6c0] sm:$0xff]  ;;  %v3954_v40 = vcombine.high %v186_v34, %v190_v35  ;;  %2559 = vmatprep.subr.bf16.mxu1 %v4090_v33  ;;  %v3953_v46 = vcombine.low %v186_v34, %v190_v35  ;;  %v4627_v34 = vmov 0  }
  0x74   :  { %v318_v37 = vld [vmem:[#allocation5 + $0x6e0] sm:$0xff]  ;;  %2560 = vmatpush2.bf16.msra.mxu1 %v4089_v39 }
  0x75   :  { %v4082_v41 = vcombine.high %v314_v36, %v318_v37  ;;  %v178_v42 = vld [vmem:[#allocation5 + $0x280] sm:$0xff]  ;;  %2520 = vmatprep.subr.bf16.mxu0 %v3954_v40  ;;  %v4081_v47 = vcombine.low %v314_v36, %v318_v37  ;;  %v4690_v37 = vpack.c.bf16 %v90_v27, %v90_v27  ;;  %v139_v40 = vld [vmem:[#allocation5 + $0x148] sm:$0xff] }
  0x76   :  { %v182_v43 = vld [vmem:[#allocation5 + $0x2a0] sm:$0xff]  ;;  %2521 = vmatpush2.bf16.msra.mxu0 %v3953_v46  ;;  %v3915_v46 = vcombine.low %v147_v31, %v151_v32 }
  0x77   :  { %v306_v44 = vld [vmem:[#allocation5 + $0x680] sm:$0xff]  ;;  %v3946_v48 = vcombine.high %v178_v42, %v182_v43  ;;  %2561 = vmatprep.subr.bf16.mxu1 %v4082_v41  ;;  %v3945_v54 = vcombine.low %v178_v42, %v182_v43  ;;  %v143_v41 = vld [vmem:[#allocation5 + $0x168] sm:$0xff]  ;;  %v3916_v43 = vcombine.high %v147_v31, %v151_v32 }
  0x78   :  { %v310_v45 = vld [vmem:[#allocation5 + $0x6a0] sm:$0xff]  ;;  %2562 = vmatpush2.bf16.msra.mxu1 %v4081_v47 }
  0x79   :  { %v4074_v49 = vcombine.high %v306_v44, %v310_v45  ;;  %v170_v50 = vld [vmem:[#allocation5 + $0x240] sm:$0xff]  ;;  %2522 = vmatprep.subr.bf16.mxu0 %v3946_v48  ;;  %v4073_v55 = vcombine.low %v306_v44, %v310_v45  ;;  %v131_v48 = vld [vmem:[#allocation5 + $0x108] sm:$0xff] }
  0x7a   :  { %v174_v51 = vld [vmem:[#allocation5 + $0x260] sm:$0xff]  ;;  %2523 = vmatpush2.bf16.msra.mxu0 %v3945_v54  ;;  %v3907_v54 = vcombine.low %v139_v40, %v143_v41 }
  0x7b   :  { %v298_v52 = vld [vmem:[#allocation5 + $0x640] sm:$0xff]  ;;  %v3938_v56 = vcombine.high %v170_v50, %v174_v51  ;;  %2563 = vmatprep.subr.bf16.mxu1 %v4074_v49  ;;  %v3937_v0 = vcombine.low %v170_v50, %v174_v51  ;;  %v135_v49 = vld [vmem:[#allocation5 + $0x128] sm:$0xff]  ;;  %v3908_v51 = vcombine.high %v139_v40, %v143_v41 }
  0x7c   :  { %v302_v53 = vld [vmem:[#allocation5 + $0x660] sm:$0xff]  ;;  %2564 = vmatpush2.bf16.msra.mxu1 %v4073_v55  ;;  %v215_v40 = vld [vmem:[#allocation5 + $0x3a8] sm:$0xff] }
  0x7d   :  { %v4066_v57 = vcombine.high %v298_v52, %v302_v53  ;;  %v162_v60 = vld [vmem:[#allocation5 + $0x200] sm:$0xff]  ;;  %2524 = vmatprep.subr.bf16.mxu0 %v3938_v56  ;;  %v4065_v1 = vcombine.low %v298_v52, %v302_v53  ;;  %v123_v56 = vld [vmem:[#allocation5 + $0xc8] sm:$0xff] }
  0x7e   :  { %v166_v61 = vld [vmem:[#allocation5 + $0x220] sm:$0xff]  ;;  %2525 = vmatpush2.bf16.msra.mxu0 %v3937_v0  ;;  %v3899_v0 = vcombine.low %v131_v48, %v135_v49 }
  0x7f   :  { %v290_v62 = vld [vmem:[#allocation5 + $0x600] sm:$0xff]  ;;  %v3930_v2 = vcombine.high %v162_v60, %v166_v61  ;;  %2565 = vmatprep.subr.bf16.mxu1 %v4066_v57  ;;  %v3929_v8 = vcombine.low %v162_v60, %v166_v61  ;;  %v127_v57 = vld [vmem:[#allocation5 + $0xe8] sm:$0xff]  ;;  %v3900_v61 = vcombine.high %v131_v48, %v135_v49 }
  0x80   :  { %v294_v63 = vld [vmem:[#allocation5 + $0x620] sm:$0xff]  ;;  %2566 = vmatpush2.bf16.msra.mxu1 %v4065_v1  ;;  %v207_v48 = vld [vmem:[#allocation5 + $0x368] sm:$0xff] }
  0x81   :  { %v4058_v3 = vcombine.high %v290_v62, %v294_v63  ;;  %v410_v4 = vld [vmem:[#allocation5 + $0x9c0] sm:$0xff]  ;;  %2526 = vmatprep.subr.bf16.mxu0 %v3930_v2  ;;  %v4057_v10 = vcombine.low %v290_v62, %v294_v63  ;;  %v115_v2 = vld [vmem:[#allocation5 + $0x88] sm:$0xff] }
  0x82   :  { %v414_v5 = vld [vmem:[#allocation5 + $0x9e0] sm:$0xff]  ;;  %2527 = vmatpush2.bf16.msra.mxu0 %v3929_v8  ;;  %v3891_v8 = vcombine.low %v123_v56, %v127_v57 }
  0x83   :  { %v482_v6 = vld [vmem:[#allocation5 + $0xc00] sm:$0xff]  ;;  %v4178_v12 = vcombine.high %v410_v4, %v414_v5  ;;  %2567 = vmatprep.subr.bf16.mxu1 %v4058_v3  ;;  %v4177_v20 = vcombine.low %v410_v4, %v414_v5  ;;  %v119_v3 = vld [vmem:[#allocation5 + $0xa8] sm:$0xff]  ;;  %v3892_v5 = vcombine.high %v123_v56, %v127_v57 }
  0x84   :  { %v486_v7 = vld [vmem:[#allocation5 + $0xc20] sm:$0xff]  ;;  %2568 = vmatpush2.bf16.msra.mxu1 %v4057_v10  ;;  %v107_v10 = vld [vmem:[#allocation5 + $0x48] sm:$0xff]  ;;  %v3883_v17 = vcombine.low %v115_v2, %v119_v3 }
  0x85   :  { %v4250_v13 = vcombine.high %v482_v6, %v486_v7  ;;  %v402_v14 = vld [vmem:[#allocation5 + $0x980] sm:$0xff]  ;;  %2578 = vmatprep.subr.bf16.mxu0 %v4178_v12  ;;  %v4249_v22 = vcombine.low %v482_v6, %v486_v7  ;;  %2529 = vmatmul.mubr.bf16.vlgmr.msra.gmra.mxu0 %v4680_v16  ;;  %v199_v56 = vld [vmem:[#allocation5 + $0x328] sm:$0xff] }
  0x86   :  { %v406_v15 = vld [vmem:[#allocation5 + $0x9a0] sm:$0xff]  ;;  %2579 = vmatpush1.bf16.msra.mxu0 %v4177_v20  ;;  %2610 = vmatprep.mubr.bf16.mxu0 %v4685_v28  ;;  %v99_v20 = vld [vmem:[#allocation5 + $0x8] sm:$0xff] }
  0x87   :  { %v4170_v23 = vcombine.high %v402_v14, %v406_v15  ;;  %v394_v24 = vld [vmem:[#allocation5 + $0x940] sm:$0xff]  ;;  %2633 = vmatprep.subr.bf16.mxu1 %v4250_v13  ;;  %2570 = vmatmul.mubr.bf16.vlgmr.msra.gmra.mxu1 %v4682_v19  ;;  %v4169_v29 = vcombine.low %v402_v14, %v406_v15  ;;  %v3884_v13 = vcombine.high %v115_v2, %v119_v3  ;;  %v191_v2 = vld [vmem:[#allocation5 + $0x2e8] sm:$0xff] }
  0x88   :  { %v398_v26 = vld [vmem:[#allocation5 + $0x960] sm:$0xff]  ;;  %2634 = vmatpush1.bf16.msra.mxu1 %v4249_v22  ;;  %2651 = vmatprep.mubr.bf16.mxu1 %v4627_v34  ;;  %v3868_v32 = vcombine.high %v99_v20, %v103_v21 }
  0x89   :  { %2580 = vmatprep.subr.bf16.mxu0 %v4170_v23  ;;  %v4162_v30 = vcombine.high %v394_v24, %v398_v26  ;;  %v386_v33 = vld [vmem:[#allocation5 + $0x900] sm:$0xff]  ;;  %2660 = vmatprep.subr.bf16.mxu1 %v3924_v25  ;;  %v4161_v36 = vcombine.low %v394_v24, %v398_v26  ;;  %v3876_v23 = vcombine.high %v107_v10, %v111_v11 }
  0x8a   :  { %v390_v35 = vld [vmem:[#allocation5 + $0x920] sm:$0xff]  ;;  %2581 = vmatpush1.bf16.msra.mxu0 %v4169_v29  ;;  %v3875_v26 = vcombine.low %v107_v10, %v111_v11  ;;  %v219_v29 = vld [vmem:[#allocation5 + $0x3c8] sm:$0xff] }
  0x8b   :  { %2582 = vmatprep.subr.bf16.mxu0 %v4162_v30  ;;  %v4154_v39 = vcombine.high %v386_v33, %v390_v35  ;;  %v378_v42 = vld [vmem:[#allocation5 + $0x8c0] sm:$0xff]  ;;  %v4153_v45 = vcombine.low %v386_v33, %v390_v35  ;;  %v223_v30 = vld [vmem:[#allocation5 + $0x3e8] sm:$0xff] }
  0x8c   :  { %v382_v44 = vld [vmem:[#allocation5 + $0x8e0] sm:$0xff]  ;;  %v183_v10 = vld [vmem:[#allocation5 + $0x2a8] sm:$0xff] }
  0x8d   :  { %v4146_v47 = vcombine.high %v378_v42, %v382_v44  ;;  %v370_v50 = vld [vmem:[#allocation5 + $0x880] sm:$0xff]  ;;  %v4145_v53 = vcombine.low %v378_v42, %v382_v44  ;;  %v3988_v42 = vcombine.high %v219_v29, %v223_v30 }
  0x8e   :  { %2583 = vmatpush1.bf16.msra.mxu0 %v4161_v36  ;;  %v374_v52 = vld [vmem:[#allocation5 + $0x8a0] sm:$0xff]  ;;  %v3867_v36 = vcombine.low %v99_v20, %v103_v21  ;;  %v175_v20 = vld [vmem:[#allocation5 + $0x268] sm:$0xff] }
  0x8f   :  { %4257 = vmatmul.mubr.msk.bf16.vlgmr.msra.gmra.mxu1 %vm2492_vm0, %v4690_v37  ;;  %2584 = vmatprep.subr.bf16.mxu0 %v4154_v39  ;;  %v4138_v55 = vcombine.high %v370_v50, %v374_v52  ;;  %v362_v60 = vld [vmem:[#allocation5 + $0x840] sm:$0xff]  ;;  %v4137_v63 = vcombine.low %v370_v50, %v374_v52  ;;  %v211_v39 = vld [vmem:[#allocation5 + $0x388] sm:$0xff] }
  0x90   :  { %2661 = vmatpush1.bf16.msra.mxu1 %v3923_v38  ;;  %2692 = vmatprep.mubr.bf16.mxu1 %v4674_v58  ;;  %v366_v62 = vld [vmem:[#allocation5 + $0x860] sm:$0xff]  ;;  %v3980_v50 = vcombine.high %v211_v39, %v215_v40  ;;  %v283_v21 = vld [vmem:[#allocation5 + $0x5c8] sm:$0xff] }
  0x91   :  { %2662 = vmatprep.subr.bf16.mxu1 %v3916_v43  ;;  %v4130_v1 = vcombine.high %v362_v60, %v366_v62  ;;  %v354_v4 = vld [vmem:[#allocation5 + $0x800] sm:$0xff]  ;;  %v4129_v7 = vcombine.low %v362_v60, %v366_v62 }
  0x92   :  { %2585 = vmatpush1.bf16.msra.mxu0 %v4153_v45  ;;  %v358_v6 = vld [vmem:[#allocation5 + $0x820] sm:$0xff]  ;;  %v3987_v45 = vcombine.low %v219_v29, %v223_v30  ;;  %v163_v29 = vld [vmem:[#allocation5 + $0x208] sm:$0xff] }
  0x93   :  { %2586 = vmatprep.subr.bf16.mxu0 %v4146_v47  ;;  %v4122_v9 = vcombine.high %v354_v4, %v358_v6  ;;  %v474_v12 = vld [vmem:[#allocation5 + $0xbc0] sm:$0xff]  ;;  %v4121_v15 = vcombine.low %v354_v4, %v358_v6  ;;  %v203_v47 = vld [vmem:[#allocation5 + $0x348] sm:$0xff] }
  0x94   :  { %2663 = vmatpush1.bf16.msra.mxu1 %v3915_v46  ;;  %v478_v14 = vld [vmem:[#allocation5 + $0xbe0] sm:$0xff]  ;;  %v3972_v60 = vcombine.high %v203_v47, %v207_v48  ;;  %v167_v30 = vld [vmem:[#allocation5 + $0x228] sm:$0xff] }
  0x95   :  { %2664 = vmatprep.subr.bf16.mxu1 %v3908_v51  ;;  %v4242_v18 = vcombine.high %v474_v12, %v478_v14  ;;  %v466_v22 = vld [vmem:[#allocation5 + $0xb80] sm:$0xff]  ;;  %v4241_v25 = vcombine.low %v474_v12, %v478_v14 }
  0x96   :  { %2587 = vmatpush1.bf16.msra.mxu0 %v4145_v53  ;;  %v470_v24 = vld [vmem:[#allocation5 + $0xba0] sm:$0xff]  ;;  %v3979_v53 = vcombine.low %v211_v39, %v215_v40  ;;  %v3932_v40 = vcombine.high %v163_v29, %v167_v30 }
  0x97   :  { %2588 = vmatprep.subr.bf16.mxu0 %v4138_v55  ;;  %v4234_v27 = vcombine.high %v466_v22, %v470_v24  ;;  %v458_v31 = vld [vmem:[#allocation5 + $0xb40] sm:$0xff]  ;;  %v4233_v35 = vcombine.low %v466_v22, %v470_v24  ;;  %v195_v55 = vld [vmem:[#allocation5 + $0x308] sm:$0xff] }
  0x98   :  { %2665 = vmatpush1.bf16.msra.mxu1 %v3907_v54  ;;  %v462_v33 = vld [vmem:[#allocation5 + $0xb60] sm:$0xff]  ;;  %v3964_v4 = vcombine.high %v195_v55, %v199_v56  ;;  %v287_v24 = vld [vmem:[#allocation5 + $0x5e8] sm:$0xff] }
  0x99   :  { %2666 = vmatprep.subr.bf16.mxu1 %v3900_v61  ;;  %v4226_v38 = vcombine.high %v458_v31, %v462_v33  ;;  %v450_v41 = vld [vmem:[#allocation5 + $0xb00] sm:$0xff]  ;;  %v4225_v44 = vcombine.low %v458_v31, %v462_v33  ;;  %v275_v31 = vld [vmem:[#allocation5 + $0x588] sm:$0xff] }
  0x9a   :  { %2589 = vmatpush1.bf16.msra.mxu0 %v4137_v63  ;;  %v454_v43 = vld [vmem:[#allocation5 + $0xb20] sm:$0xff]  ;;  %v3971_v63 = vcombine.low %v203_v47, %v207_v48  ;;  %v279_v33 = vld [vmem:[#allocation5 + $0x5a8] sm:$0xff] }
  0x9b   :  { %2590 = vmatprep.subr.bf16.mxu0 %v4130_v1  ;;  %v4218_v46 = vcombine.high %v450_v41, %v454_v43  ;;  %v442_v49 = vld [vmem:[#allocation5 + $0xac0] sm:$0xff]  ;;  %v4217_v52 = vcombine.low %v450_v41, %v454_v43  ;;  %v187_v1 = vld [vmem:[#allocation5 + $0x2c8] sm:$0xff]  ;;  %v4044_v39 = vcombine.high %v275_v31, %v279_v33 }
  0x9c   :  { %2667 = vmatpush1.bf16.msra.mxu1 %v3899_v0  ;;  %v446_v51 = vld [vmem:[#allocation5 + $0xae0] sm:$0xff]  ;;  %v3956_v12 = vcombine.high %v187_v1, %v191_v2  ;;  %v267_v41 = vld [vmem:[#allocation5 + $0x548] sm:$0xff] }
  0x9d   :  { %2668 = vmatprep.subr.bf16.mxu1 %v3892_v5  ;;  %v4210_v54 = vcombine.high %v442_v49, %v446_v51  ;;  %v434_v57 = vld [vmem:[#allocation5 + $0xa80] sm:$0xff]  ;;  %v4209_v62 = vcombine.low %v442_v49, %v446_v51  ;;  %v411_v43 = vld [vmem:[#allocation5 + $0x9c8] sm:$0xff] }
  0x9e   :  { %2591 = vmatpush1.bf16.msra.mxu0 %v4129_v7  ;;  %v438_v61 = vld [vmem:[#allocation5 + $0xaa0] sm:$0xff]  ;;  %v3963_v7 = vcombine.low %v195_v55, %v199_v56  ;;  %v259_v49 = vld [vmem:[#allocation5 + $0x508] sm:$0xff] }
  0x9f   :  { %2592 = vmatprep.subr.bf16.mxu0 %v4122_v9  ;;  %v4202_v0 = vcombine.high %v434_v57, %v438_v61  ;;  %v426_v3 = vld [vmem:[#allocation5 + $0xa40] sm:$0xff]  ;;  %v4201_v6 = vcombine.low %v434_v57, %v438_v61  ;;  %v179_v9 = vld [vmem:[#allocation5 + $0x288] sm:$0xff] }
  0xa0   :  { %2669 = vmatpush1.bf16.msra.mxu1 %v3891_v8  ;;  %v430_v5 = vld [vmem:[#allocation5 + $0xa60] sm:$0xff]  ;;  %v3948_v22 = vcombine.high %v179_v9, %v183_v10  ;;  %v403_v51 = vld [vmem:[#allocation5 + $0x988] sm:$0xff] }
  0xa1   :  { %2670 = vmatprep.subr.bf16.mxu1 %v3884_v13  ;;  %v4194_v8 = vcombine.high %v426_v3, %v430_v5  ;;  %v418_v11 = vld [vmem:[#allocation5 + $0xa00] sm:$0xff]  ;;  %v4193_v14 = vcombine.low %v426_v3, %v430_v5  ;;  %v251_v57 = vld [vmem:[#allocation5 + $0x4c8] sm:$0xff] }
  0xa2   :  { %2593 = vmatpush1.bf16.msra.mxu0 %v4121_v15  ;;  %v422_v13 = vld [vmem:[#allocation5 + $0xa20] sm:$0xff]  ;;  %v3955_v15 = vcombine.low %v187_v1, %v191_v2  ;;  %v395_v61 = vld [vmem:[#allocation5 + $0x948] sm:$0xff] }
  0xa3   :  { %2594 = vmatprep.subr.bf16.mxu0 %v4242_v18  ;;  %v171_v18 = vld [vmem:[#allocation5 + $0x248] sm:$0xff] }
  0xa4   :  { %2671 = vmatpush1.bf16.msra.mxu1 %v3883_v17  ;;  %v4186_v17 = vcombine.high %v418_v11, %v422_v13  ;;  %v243_v3 = vld [vmem:[#allocation5 + $0x488] sm:$0xff] }
  0xa5   :  { %2672 = vmatprep.subr.bf16.mxu1 %v3876_v23  ;;  %v88_v23 = vld [vmem:[#allocation2 + $0x20] sm:$0xff] }
  0xa6   :  { %2595 = vmatpush2.bf16.msra.mxu0 %v4241_v25  ;;  %v4185_v25 = vcombine.low %v418_v11, %v422_v13  ;;  %v387_v5 = vld [vmem:[#allocation5 + $0x908] sm:$0xff] }
  0xa7   :  { %2596 = vmatprep.subr.bf16.mxu0 %v4234_v27  ;;  %v4052_v27 = vcombine.high %v283_v21, %v287_v24  ;;  %v235_v11 = vld [vmem:[#allocation5 + $0x448] sm:$0xff] }
  0xa8   :  { %2673 = vmatpush1.bf16.msra.mxu1 %v3875_v26  ;;  %v3947_v26 = vcombine.low %v179_v9, %v183_v10  ;;  %v379_v13 = vld [vmem:[#allocation5 + $0x8c8] sm:$0xff] }
  0xa9   :  { %2674 = vmatprep.subr.bf16.mxu1 %v3868_v32  ;;  %v3940_v32 = vcombine.high %v171_v18, %v175_v20 }
  0xaa   :  { %2597 = vmatpush2.bf16.msra.mxu0 %v4233_v35  ;;  %v4695_v35 = vpack.c.bf16 %v88_v23, %v88_v23  ;;  %v371_v23 = vld [vmem:[#allocation5 + $0x888] sm:$0xff] }
  0xab   :  { %2598 = vmatprep.subr.bf16.mxu0 %v4226_v38  ;;  %v3939_v38 = vcombine.low %v171_v18, %v175_v20 }
  0xac   :  { %2675 = vmatpush1.bf16.msra.mxu1 %v3867_v36  ;;  %v4051_v36 = vcombine.low %v283_v21, %v287_v24  ;;  %v227_v21 = vld [vmem:[#allocation5 + $0x408] sm:$0xff] }
  0xad   :  { %2676 = vmatprep.subr.bf16.mxu1 %v3988_v42  ;;  %v271_v42 = vld [vmem:[#allocation5 + $0x568] sm:$0xff] }
  0xae   :  { %2599 = vmatpush2.bf16.msra.mxu0 %v4225_v44  ;;  %v415_v44 = vld [vmem:[#allocation5 + $0x9e8] sm:$0xff]  ;;  %v4036_v47 = vcombine.high %v267_v41, %v271_v42 }
  0xaf   :  { %2600 = vmatprep.subr.bf16.mxu0 %v4218_v46  ;;  %v3931_v46 = vcombine.low %v163_v29, %v167_v30  ;;  %v4180_v48 = vcombine.high %v411_v43, %v415_v44  ;;  %v375_v24 = vld [vmem:[#allocation5 + $0x8a8] sm:$0xff] }
  0xb0   :  { %2677 = vmatpush2.bf16.msra.mxu1 %v3987_v45  ;;  %v4043_v45 = vcombine.low %v275_v31, %v279_v33  ;;  %v4140_v29 = vcombine.high %v371_v23, %v375_v24  ;;  %v347_v30 = vld [vmem:[#allocation5 + $0x7c8] sm:$0xff] }
  0xb1   :  { %2678 = vmatprep.subr.bf16.mxu1 %v3980_v50  ;;  %v263_v50 = vld [vmem:[#allocation5 + $0x528] sm:$0xff] }
  0xb2   :  { %2601 = vmatpush2.bf16.msra.mxu0 %v4217_v52  ;;  %v407_v52 = vld [vmem:[#allocation5 + $0x9a8] sm:$0xff]  ;;  %v4028_v55 = vcombine.high %v259_v49, %v263_v50 }
  0xb3   :  { %2602 = vmatprep.subr.bf16.mxu0 %v4210_v54  ;;  %v4179_v54 = vcombine.low %v411_v43, %v415_v44  ;;  %v4172_v56 = vcombine.high %v403_v51, %v407_v52  ;;  %v351_v31 = vld [vmem:[#allocation5 + $0x7e8] sm:$0xff] }
  0xb4   :  { %2679 = vmatpush2.bf16.msra.mxu1 %v3979_v53  ;;  %v4035_v53 = vcombine.low %v267_v41, %v271_v42  ;;  %v367_v33 = vld [vmem:[#allocation5 + $0x868] sm:$0xff] }
  0xb5   :  { %2680 = vmatprep.subr.bf16.mxu1 %v3972_v60  ;;  %v255_v60 = vld [vmem:[#allocation5 + $0x4e8] sm:$0xff] }
  0xb6   :  { %2603 = vmatpush2.bf16.msra.mxu0 %v4209_v62  ;;  %v399_v62 = vld [vmem:[#allocation5 + $0x968] sm:$0xff]  ;;  %v4020_v1 = vcombine.high %v251_v57, %v255_v60 }
  0xb7   :  { %2604 = vmatprep.subr.bf16.mxu0 %v4202_v0  ;;  %v4171_v0 = vcombine.low %v403_v51, %v407_v52  ;;  %v4164_v2 = vcombine.high %v395_v61, %v399_v62  ;;  %v339_v41 = vld [vmem:[#allocation5 + $0x788] sm:$0xff] }
  0xb8   :  { %2681 = vmatpush2.bf16.msra.mxu1 %v3971_v63  ;;  %v4027_v63 = vcombine.low %v259_v49, %v263_v50  ;;  %v343_v42 = vld [vmem:[#allocation5 + $0x7a8] sm:$0xff] }
  0xb9   :  { %2682 = vmatprep.subr.bf16.mxu1 %v3964_v4  ;;  %v247_v4 = vld [vmem:[#allocation5 + $0x4a8] sm:$0xff] }
  0xba   :  { %2605 = vmatpush2.bf16.msra.mxu0 %v4201_v6  ;;  %v391_v6 = vld [vmem:[#allocation5 + $0x928] sm:$0xff]  ;;  %v4012_v9 = vcombine.high %v243_v3, %v247_v4 }
  0xbb   :  { %2606 = vmatprep.subr.bf16.mxu0 %v4194_v8  ;;  %v4163_v8 = vcombine.low %v395_v61, %v399_v62  ;;  %v4156_v10 = vcombine.high %v387_v5, %v391_v6  ;;  %v355_v43 = vld [vmem:[#allocation5 + $0x808] sm:$0xff] }
  0xbc   :  { %2683 = vmatpush2.bf16.msra.mxu1 %v3963_v7  ;;  %v4019_v7 = vcombine.low %v251_v57, %v255_v60  ;;  %v359_v44 = vld [vmem:[#allocation5 + $0x828] sm:$0xff] }
  0xbd   :  { %2684 = vmatprep.subr.bf16.mxu1 %v3956_v12  ;;  %v239_v12 = vld [vmem:[#allocation5 + $0x468] sm:$0xff] }
  0xbe   :  { %2607 = vmatpush2.bf16.msra.mxu0 %v4193_v14  ;;  %v383_v14 = vld [vmem:[#allocation5 + $0x8e8] sm:$0xff]  ;;  %v4004_v18 = vcombine.high %v235_v11, %v239_v12 }
  0xbf   :  { %2608 = vmatprep.subr.bf16.mxu0 %v4186_v17  ;;  %v4155_v17 = vcombine.low %v387_v5, %v391_v6  ;;  %v4148_v20 = vcombine.high %v379_v13, %v383_v14  ;;  %v331_v49 = vld [vmem:[#allocation5 + $0x748] sm:$0xff] }
  0xc0   :  { %2685 = vmatpush2.bf16.msra.mxu1 %v3955_v15  ;;  %v4011_v15 = vcombine.low %v243_v3, %v247_v4  ;;  %v335_v50 = vld [vmem:[#allocation5 + $0x768] sm:$0xff] }
  0xc1   :  { %2686 = vmatprep.subr.bf16.mxu1 %v3948_v22  ;;  %v231_v22 = vld [vmem:[#allocation5 + $0x428] sm:$0xff] }
  0xc2   :  { %2609 = vmatpush2.bf16.msra.mxu0 %v4185_v25  ;;  %v4003_v25 = vcombine.low %v235_v11, %v239_v12  ;;  %v475_v51 = vld [vmem:[#allocation5 + $0xbc8] sm:$0xff] }
  0xc3   :  { %2701 = vmatprep.subr.bf16.mxu0 %v4052_v27  ;;  %v3996_v27 = vcombine.high %v227_v21, %v231_v22  ;;  %v479_v52 = vld [vmem:[#allocation5 + $0xbe8] sm:$0xff] }
  0xc4   :  { %2687 = vmatpush2.bf16.msra.mxu1 %v3947_v26  ;;  %v4147_v26 = vcombine.low %v379_v13, %v383_v14  ;;  %v323_v57 = vld [vmem:[#allocation5 + $0x708] sm:$0xff] }
  0xc5   :  { %2688 = vmatprep.subr.bf16.mxu1 %v3940_v32  ;;  %2611 = vmatmul.mubr.bf16.vlgmr.msra.gmra.mxu0 %v4695_v35  ;;  %v363_v32 = vld [vmem:[#allocation5 + $0x848] sm:$0xff] }
  0xc6   :  { %2702 = vmatpush1.bf16.msra.mxu0 %v4051_v36  ;;  %2733 = vmatprep.mubr.bf16.mxu0 %v4676_v59  ;;  %v3995_v36 = vcombine.low %v227_v21, %v231_v22  ;;  %v327_v60 = vld [vmem:[#allocation5 + $0x728] sm:$0xff] }
  0xc7   :  { %2703 = vmatprep.subr.bf16.mxu0 %v4044_v39  ;;  %v4116_v39 = vcombine.high %v347_v30, %v351_v31  ;;  %v467_v61 = vld [vmem:[#allocation5 + $0xb88] sm:$0xff] }
  0xc8   :  { %2689 = vmatpush2.bf16.msra.mxu1 %v3939_v38  ;;  %v4139_v38 = vcombine.low %v371_v23, %v375_v24  ;;  %v471_v62 = vld [vmem:[#allocation5 + $0xba8] sm:$0xff] }
  0xc9   :  { %2690 = vmatprep.subr.bf16.mxu1 %v3932_v40  ;;  %v4132_v40 = vcombine.high %v363_v32, %v367_v33  ;;  %v315_v3 = vld [vmem:[#allocation5 + $0x6c8] sm:$0xff] }
  0xca   :  { %2704 = vmatpush1.bf16.msra.mxu0 %v4043_v45  ;;  %v4115_v45 = vcombine.low %v347_v30, %v351_v31  ;;  %v319_v4 = vld [vmem:[#allocation5 + $0x6e8] sm:$0xff] }
  0xcb   :  { %2705 = vmatprep.subr.bf16.mxu0 %v4036_v47  ;;  %v4108_v47 = vcombine.high %v339_v41, %v343_v42  ;;  %v459_v5 = vld [vmem:[#allocation5 + $0xb48] sm:$0xff] }
  0xcc   :  { %2691 = vmatpush2.bf16.msra.mxu1 %v3931_v46  ;;  %v4131_v46 = vcombine.low %v363_v32, %v367_v33  ;;  %v463_v6 = vld [vmem:[#allocation5 + $0xb68] sm:$0xff] }
  0xcd   :  { %2742 = vmatprep.subr.bf16.mxu1 %v4180_v48  ;;  %v4124_v48 = vcombine.high %v355_v43, %v359_v44  ;;  %v307_v11 = vld [vmem:[#allocation5 + $0x688] sm:$0xff] }
  0xce   :  { %2706 = vmatpush1.bf16.msra.mxu0 %v4035_v53  ;;  %v4107_v53 = vcombine.low %v339_v41, %v343_v42  ;;  %v311_v12 = vld [vmem:[#allocation5 + $0x6a8] sm:$0xff] }
  0xcf   :  { %2693 = vmatmul.mubr.bf16.vlgmr.msra.gmra.mxu1 %v4680_v16  ;;  %2707 = vmatprep.subr.bf16.mxu0 %v4028_v55  ;;  %v4100_v55 = vcombine.high %v331_v49, %v335_v50  ;;  %v451_v13 = vld [vmem:[#allocation5 + $0xb08] sm:$0xff] }
  0xd0   :  { %2743 = vmatpush1.bf16.msra.mxu1 %v4179_v54  ;;  %2774 = vmatprep.mubr.bf16.mxu1 %v4685_v28  ;;  %v4123_v54 = vcombine.low %v355_v43, %v359_v44  ;;  %v455_v14 = vld [vmem:[#allocation5 + $0xb28] sm:$0xff] }
  0xd1   :  { %2744 = vmatprep.subr.bf16.mxu1 %v4172_v56  ;;  %v4244_v56 = vcombine.high %v475_v51, %v479_v52  ;;  %v299_v21 = vld [vmem:[#allocation5 + $0x648] sm:$0xff] }
  0xd2   :  { %2708 = vmatpush1.bf16.msra.mxu0 %v4027_v63  ;;  %v4099_v63 = vcombine.low %v331_v49, %v335_v50  ;;  %v303_v22 = vld [vmem:[#allocation5 + $0x668] sm:$0xff]  ;;  %v156_v49 = vld [vmem:[#allocation5 + $0x1d0] sm:$0xff] }
  0xd3   :  { %2709 = vmatprep.subr.bf16.mxu0 %v4020_v1  ;;  %v4092_v1 = vcombine.high %v323_v57, %v327_v60  ;;  %v443_v23 = vld [vmem:[#allocation5 + $0xac8] sm:$0xff]  ;;  %v160_v50 = vld [vmem:[#allocation5 + $0x1f0] sm:$0xff] }
  0xd4   :  { %2745 = vmatpush1.bf16.msra.mxu1 %v4171_v0  ;;  %v4243_v0 = vcombine.low %v475_v51, %v479_v52  ;;  %v447_v24 = vld [vmem:[#allocation5 + $0xae8] sm:$0xff] }
  0xd5   :  { %2746 = vmatprep.subr.bf16.mxu1 %v4164_v2  ;;  %v4236_v2 = vcombine.high %v467_v61, %v471_v62  ;;  %v291_v30 = vld [vmem:[#allocation5 + $0x608] sm:$0xff] }
  0xd6   :  { %2710 = vmatpush1.bf16.msra.mxu0 %v4019_v7  ;;  %v4091_v7 = vcombine.low %v323_v57, %v327_v60  ;;  %v295_v31 = vld [vmem:[#allocation5 + $0x628] sm:$0xff]  ;;  %v284_v57 = vld [vmem:[#allocation5 + $0x5d0] sm:$0xff] }
  0xd7   :  { %2711 = vmatprep.subr.bf16.mxu0 %v4012_v9  ;;  %v4084_v9 = vcombine.high %v315_v3, %v319_v4  ;;  %v435_v32 = vld [vmem:[#allocation5 + $0xa88] sm:$0xff]  ;;  %v288_v60 = vld [vmem:[#allocation5 + $0x5f0] sm:$0xff] }
  0xd8   :  { %2747 = vmatpush1.bf16.msra.mxu1 %v4163_v8  ;;  %v4235_v8 = vcombine.low %v467_v61, %v471_v62  ;;  %v439_v33 = vld [vmem:[#allocation5 + $0xaa8] sm:$0xff]  ;;  %v4054_v62 = vcombine.high %v284_v57, %v288_v60 }
  0xd9   :  { %2748 = vmatprep.subr.bf16.mxu1 %v4156_v10  ;;  %v4228_v10 = vcombine.high %v459_v5, %v463_v6  ;;  %v483_v41 = vld [vmem:[#allocation5 + $0xc08] sm:$0xff] }
  0xda   :  { %2712 = vmatpush1.bf16.msra.mxu0 %v4011_v15  ;;  %v4083_v15 = vcombine.low %v315_v3, %v319_v4  ;;  %v487_v42 = vld [vmem:[#allocation5 + $0xc28] sm:$0xff]  ;;  %v3925_v3 = vcombine.low %v156_v49, %v160_v50  ;;  %v4053_v4 = vcombine.low %v284_v57, %v288_v60 }
  0xdb   :  { %2713 = vmatprep.subr.bf16.mxu0 %v4004_v18  ;;  %v4076_v18 = vcombine.high %v307_v11, %v311_v12  ;;  %v427_v43 = vld [vmem:[#allocation5 + $0xa48] sm:$0xff] }
  0xdc   :  { %2749 = vmatpush1.bf16.msra.mxu1 %v4155_v17  ;;  %v4227_v17 = vcombine.low %v459_v5, %v463_v6  ;;  %v431_v44 = vld [vmem:[#allocation5 + $0xa68] sm:$0xff] }
  0xdd   :  { %2750 = vmatprep.subr.bf16.mxu1 %v4148_v20  ;;  %v4220_v20 = vcombine.high %v451_v13, %v455_v14  ;;  %v419_v51 = vld [vmem:[#allocation5 + $0xa08] sm:$0xff] }
  0xde   :  { %2714 = vmatpush1.bf16.msra.mxu0 %v4003_v25  ;;  %v4075_v25 = vcombine.low %v307_v11, %v311_v12  ;;  %v423_v52 = vld [vmem:[#allocation5 + $0xa28] sm:$0xff] }
  0xdf   :  { %2715 = vmatprep.subr.bf16.mxu0 %v3996_v27  ;;  %v4068_v27 = vcombine.high %v299_v21, %v303_v22  ;;  %v4187_v61 = vcombine.low %v419_v51, %v423_v52 }
  0xe0   :  { %2751 = vmatpush1.bf16.msra.mxu1 %v4147_v26  ;;  %v4219_v26 = vcombine.low %v451_v13, %v455_v14 }
  0xe1   :  { %2752 = vmatprep.subr.bf16.mxu1 %v4140_v29  ;;  %v4212_v29 = vcombine.high %v443_v23, %v447_v24 }
  0xe2   :  { %2716 = vmatpush1.bf16.msra.mxu0 %v3995_v36  ;;  %v4067_v36 = vcombine.low %v299_v21, %v303_v22 }
  0xe3   :  { %2717 = vmatprep.subr.bf16.mxu0 %v4116_v39  ;;  %v4060_v39 = vcombine.high %v291_v30, %v295_v31 }
  0xe4   :  { %2753 = vmatpush1.bf16.msra.mxu1 %v4139_v38  ;;  %v4211_v38 = vcombine.low %v443_v23, %v447_v24 }
  0xe5   :  { %2754 = vmatprep.subr.bf16.mxu1 %v4132_v40  ;;  %v4204_v40 = vcombine.high %v435_v32, %v439_v33 }
  0xe6   :  { %2718 = vmatpush2.bf16.msra.mxu0 %v4115_v45  ;;  %v4059_v45 = vcombine.low %v291_v30, %v295_v31 }
  0xe7   :  { %2719 = vmatprep.subr.bf16.mxu0 %v4108_v47  ;;  %v4252_v47 = vcombine.high %v483_v41, %v487_v42 }
  0xe8   :  { %2755 = vmatpush1.bf16.msra.mxu1 %v4131_v46  ;;  %v4203_v46 = vcombine.low %v435_v32, %v439_v33 }
  0xe9   :  { %2756 = vmatprep.subr.bf16.mxu1 %v4124_v48  ;;  %v4196_v48 = vcombine.high %v427_v43, %v431_v44 }
  0xea   :  { %2720 = vmatpush2.bf16.msra.mxu0 %v4107_v53  ;;  %v4251_v53 = vcombine.low %v483_v41, %v487_v42 }
  0xeb   :  { %2721 = vmatprep.subr.bf16.mxu0 %v4100_v55  ;;  %v3926_v55 = vcombine.high %v156_v49, %v160_v50 }
  0xec   :  { %2757 = vmatpush1.bf16.msra.mxu1 %v4123_v54  ;;  %v4195_v54 = vcombine.low %v427_v43, %v431_v44 }
  0xed   :  { %2758 = vmatprep.subr.bf16.mxu1 %v4244_v56  ;;  %v4188_v56 = vcombine.high %v419_v51, %v423_v52 }
  0xee   :  { %2722 = vmatpush2.bf16.msra.mxu0 %v4099_v63  ;;  %v148_v63 = vld [vmem:[#allocation5 + $0x190] sm:$0xff] }
  0xef   :  { %2723 = vmatprep.subr.bf16.mxu0 %v4092_v1  ;;  %v276_v1 = vld [vmem:[#allocation5 + $0x590] sm:$0xff] }
  0xf0   :  { %2759 = vmatpush2.bf16.msra.mxu1 %v4243_v0  ;;  %v152_v0 = vld [vmem:[#allocation5 + $0x1b0] sm:$0xff] }
  0xf1   :  { %2760 = vmatprep.subr.bf16.mxu1 %v4236_v2  ;;  %v280_v2 = vld [vmem:[#allocation5 + $0x5b0] sm:$0xff]  ;;  %v3918_v5 = vcombine.high %v148_v63, %v152_v0  ;;  %v3917_v11 = vcombine.low %v148_v63, %v152_v0 }
  0xf2   :  { %2724 = vmatpush2.bf16.msra.mxu0 %v4091_v7  ;;  %v4046_v6 = vcombine.high %v276_v1, %v280_v2  ;;  %v140_v7 = vld [vmem:[#allocation5 + $0x150] sm:$0xff]  ;;  %v4045_v12 = vcombine.low %v276_v1, %v280_v2 }
  0xf3   :  { %2725 = vmatprep.subr.bf16.mxu0 %v4084_v9  ;;  %v268_v9 = vld [vmem:[#allocation5 + $0x550] sm:$0xff] }
  0xf4   :  { %2761 = vmatpush2.bf16.msra.mxu1 %v4235_v8  ;;  %v144_v8 = vld [vmem:[#allocation5 + $0x170] sm:$0xff] }
  0xf5   :  { %2762 = vmatprep.subr.bf16.mxu1 %v4228_v10  ;;  %v272_v10 = vld [vmem:[#allocation5 + $0x570] sm:$0xff]  ;;  %v3910_v13 = vcombine.high %v140_v7, %v144_v8  ;;  %v3909_v21 = vcombine.low %v140_v7, %v144_v8 }
  0xf6   :  { %2726 = vmatpush2.bf16.msra.mxu0 %v4083_v15  ;;  %v4038_v14 = vcombine.high %v268_v9, %v272_v10  ;;  %v132_v15 = vld [vmem:[#allocation5 + $0x110] sm:$0xff]  ;;  %v4037_v22 = vcombine.low %v268_v9, %v272_v10 }
  0xf7   :  { %2727 = vmatprep.subr.bf16.mxu0 %v4076_v18  ;;  %v260_v18 = vld [vmem:[#allocation5 + $0x510] sm:$0xff] }
  0xf8   :  { %2763 = vmatpush2.bf16.msra.mxu1 %v4227_v17  ;;  %v136_v17 = vld [vmem:[#allocation5 + $0x130] sm:$0xff] }
  0xf9   :  { %2764 = vmatprep.subr.bf16.mxu1 %v4220_v20  ;;  %v264_v20 = vld [vmem:[#allocation5 + $0x530] sm:$0xff]  ;;  %v3902_v23 = vcombine.high %v132_v15, %v136_v17  ;;  %v3901_v30 = vcombine.low %v132_v15, %v136_v17 }
  0xfa   :  { %2728 = vmatpush2.bf16.msra.mxu0 %v4075_v25  ;;  %v4030_v24 = vcombine.high %v260_v18, %v264_v20  ;;  %v124_v25 = vld [vmem:[#allocation5 + $0xd0] sm:$0xff]  ;;  %v4029_v31 = vcombine.low %v260_v18, %v264_v20 }
  0xfb   :  { %2729 = vmatprep.subr.bf16.mxu0 %v4068_v27  ;;  %v252_v27 = vld [vmem:[#allocation5 + $0x4d0] sm:$0xff] }
  0xfc   :  { %2765 = vmatpush2.bf16.msra.mxu1 %v4219_v26  ;;  %v128_v26 = vld [vmem:[#allocation5 + $0xf0] sm:$0xff] }
  0xfd   :  { %2766 = vmatprep.subr.bf16.mxu1 %v4212_v29  ;;  %v256_v29 = vld [vmem:[#allocation5 + $0x4f0] sm:$0xff]  ;;  %v3894_v32 = vcombine.high %v124_v25, %v128_v26  ;;  %v3893_v41 = vcombine.low %v124_v25, %v128_v26 }
  0xfe   :  { %2730 = vmatpush2.bf16.msra.mxu0 %v4067_v36  ;;  %v4022_v33 = vcombine.high %v252_v27, %v256_v29  ;;  %v116_v36 = vld [vmem:[#allocation5 + $0x90] sm:$0xff]  ;;  %v4021_v42 = vcombine.low %v252_v27, %v256_v29 }
  0xff   :  { %2731 = vmatprep.subr.bf16.mxu0 %v4060_v39  ;;  %v244_v39 = vld [vmem:[#allocation5 + $0x490] sm:$0xff] }
 0x100   :  { %2767 = vmatpush2.bf16.msra.mxu1 %v4211_v38  ;;  %v120_v38 = vld [vmem:[#allocation5 + $0xb0] sm:$0xff] }
 0x101   :  { %2768 = vmatprep.subr.bf16.mxu1 %v4204_v40  ;;  %v248_v40 = vld [vmem:[#allocation5 + $0x4b0] sm:$0xff]  ;;  %v3886_v43 = vcombine.high %v116_v36, %v120_v38  ;;  %v3885_v49 = vcombine.low %v116_v36, %v120_v38 }
 0x102   :  { %2732 = vmatpush2.bf16.msra.mxu0 %v4059_v45  ;;  %v4014_v44 = vcombine.high %v244_v39, %v248_v40  ;;  %v108_v45 = vld [vmem:[#allocation5 + $0x50] sm:$0xff]  ;;  %v4013_v50 = vcombine.low %v244_v39, %v248_v40 }
 0x103   :  { %2797 = vmatprep.subr.bf16.mxu0 %v4252_v47  ;;  %v236_v47 = vld [vmem:[#allocation5 + $0x450] sm:$0xff] }
 0x104   :  { %2769 = vmatpush2.bf16.msra.mxu1 %v4203_v46  ;;  %v112_v46 = vld [vmem:[#allocation5 + $0x70] sm:$0xff] }
 0x105   :  { %2770 = vmatprep.subr.bf16.mxu1 %v4196_v48  ;;  %2734 = vmatmul.mubr.bf16.vlgmr.msra.gmra.mxu0 %v4682_v19  ;;  %v240_v48 = vld [vmem:[#allocation5 + $0x470] sm:$0xff]  ;;  %v3878_v51 = vcombine.high %v108_v45, %v112_v46  ;;  %v3877_v57 = vcombine.low %v108_v45, %v112_v46 }
 0x106   :  { %2798 = vmatpush1.bf16.msra.mxu0 %v4251_v53  ;;  %2815 = vmatprep.mubr.bf16.mxu0 %v4627_v34  ;;  %v4006_v52 = vcombine.high %v236_v47, %v240_v48  ;;  %v100_v53 = vld [vmem:[#allocation5 + $0x10] sm:$0xff]  ;;  %v4005_v60 = vcombine.low %v236_v47, %v240_v48 }
 0x107   :  { %2824 = vmatprep.subr.bf16.mxu0 %v3926_v55  ;;  %v228_v55 = vld [vmem:[#allocation5 + $0x410] sm:$0xff] }
 0x108   :  { %2771 = vmatpush2.bf16.msra.mxu1 %v4195_v54  ;;  %v104_v54 = vld [vmem:[#allocation5 + $0x30] sm:$0xff] }
 0x109   :  { %2772 = vmatprep.subr.bf16.mxu1 %v4188_v56  ;;  %v232_v56 = vld [vmem:[#allocation5 + $0x430] sm:$0xff] }
 0x10a   :  { %v220_v63 = vld [vmem:[#allocation5 + $0x3d0] sm:$0xff] }
 0x10b   :  { %v224_v0 = vld [vmem:[#allocation5 + $0x3f0] sm:$0xff] }
 0x10c   :  { %2773 = vmatpush2.bf16.msra.mxu1 %v4187_v61  ;;  %v3870_v61 = vcombine.high %v100_v53, %v104_v54  ;;  %v348_v1 = vld [vmem:[#allocation5 + $0x7d0] sm:$0xff] }
 0x10d   :  { %2865 = vmatprep.subr.bf16.mxu1 %v4054_v62  ;;  %4258 = vmatmul.mubr.msk.bf16.vlgmr.msra.gmra.mxu0 %vm2492_vm0, %v4690_v37  ;;  %v3998_v62 = vcombine.high %v228_v55, %v232_v56  ;;  %v352_v2 = vld [vmem:[#allocation5 + $0x7f0] sm:$0xff] }
 0x10e   :  { %2825 = vmatpush1.bf16.msra.mxu0 %v3925_v3  ;;  %2856 = vmatprep.mubr.bf16.mxu0 %v4674_v58  ;;  %v3869_v3 = vcombine.low %v100_v53, %v104_v54  ;;  %v212_v7 = vld [vmem:[#allocation5 + $0x390] sm:$0xff] }
 0x10f   :  { %2775 = vmatmul.mubr.bf16.vlgmr.msra.gmra.mxu1 %v4695_v35  ;;  %2826 = vmatprep.subr.bf16.mxu0 %v3918_v5  ;;  %v3990_v5 = vcombine.high %v220_v63, %v224_v0  ;;  %v216_v8 = vld [vmem:[#allocation5 + $0x3b0] sm:$0xff] }
 0x110   :  { %2866 = vmatpush1.bf16.msra.mxu1 %v4053_v4  ;;  %2897 = vmatprep.mubr.bf16.mxu1 %v4676_v59  ;;  %v3997_v4 = vcombine.low %v228_v55, %v232_v56  ;;  %v340_v9 = vld [vmem:[#allocation5 + $0x790] sm:$0xff] }
 0x111   :  { %2867 = vmatprep.subr.bf16.mxu1 %v4046_v6  ;;  %v4118_v6 = vcombine.high %v348_v1, %v352_v2  ;;  %v344_v10 = vld [vmem:[#allocation5 + $0x7b0] sm:$0xff] }
 0x112   :  { %2827 = vmatpush1.bf16.msra.mxu0 %v3917_v11  ;;  %v3989_v11 = vcombine.low %v220_v63, %v224_v0  ;;  %v204_v15 = vld [vmem:[#allocation5 + $0x350] sm:$0xff] }
 0x113   :  { %2828 = vmatprep.subr.bf16.mxu0 %v3910_v13  ;;  %v3982_v13 = vcombine.high %v212_v7, %v216_v8  ;;  %v208_v17 = vld [vmem:[#allocation5 + $0x370] sm:$0xff] }
 0x114   :  { %2868 = vmatpush1.bf16.msra.mxu1 %v4045_v12  ;;  %v4117_v12 = vcombine.low %v348_v1, %v352_v2  ;;  %v332_v18 = vld [vmem:[#allocation5 + $0x750] sm:$0xff]  ;;  %v4711_v1 = vld [vmem:[#allocation7] sm:$0xff] }
 0x115   :  { %2869 = vmatprep.subr.bf16.mxu1 %v4038_v14  ;;  %v4110_v14 = vcombine.high %v340_v9, %v344_v10  ;;  %v336_v20 = vld [vmem:[#allocation5 + $0x770] sm:$0xff] }
 0x116   :  { %2829 = vmatpush1.bf16.msra.mxu0 %v3909_v21  ;;  %v3981_v21 = vcombine.low %v212_v7, %v216_v8  ;;  %v196_v25 = vld [vmem:[#allocation5 + $0x310] sm:$0xff] }
 0x117   :  { %2830 = vmatprep.subr.bf16.mxu0 %v3902_v23  ;;  %v3974_v23 = vcombine.high %v204_v15, %v208_v17  ;;  %v200_v26 = vld [vmem:[#allocation5 + $0x330] sm:$0xff] }
 0x118   :  { %2870 = vmatpush1.bf16.msra.mxu1 %v4037_v22  ;;  %v4109_v22 = vcombine.low %v340_v9, %v344_v10  ;;  %v324_v27 = vld [vmem:[#allocation5 + $0x710] sm:$0xff] }
 0x119   :  { %2871 = vmatprep.subr.bf16.mxu1 %v4030_v24  ;;  %v4102_v24 = vcombine.high %v332_v18, %v336_v20  ;;  %v328_v29 = vld [vmem:[#allocation5 + $0x730] sm:$0xff] }
 0x11a   :  { %2831 = vmatpush1.bf16.msra.mxu0 %v3901_v30  ;;  %v3973_v30 = vcombine.low %v204_v15, %v208_v17  ;;  %v188_v36 = vld [vmem:[#allocation5 + $0x2d0] sm:$0xff] }
 0x11b   :  { %2832 = vmatprep.subr.bf16.mxu0 %v3894_v32  ;;  %v3966_v32 = vcombine.high %v196_v25, %v200_v26  ;;  %v192_v38 = vld [vmem:[#allocation5 + $0x2f0] sm:$0xff] }
 0x11c   :  { %2872 = vmatpush1.bf16.msra.mxu1 %v4029_v31  ;;  %v4101_v31 = vcombine.low %v332_v18, %v336_v20  ;;  %v316_v39 = vld [vmem:[#allocation5 + $0x6d0] sm:$0xff] }
 0x11d   :  { %2873 = vmatprep.subr.bf16.mxu1 %v4022_v33  ;;  %v4094_v33 = vcombine.high %v324_v27, %v328_v29  ;;  %v320_v40 = vld [vmem:[#allocation5 + $0x6f0] sm:$0xff] }
 0x11e   :  { %2833 = vmatpush1.bf16.msra.mxu0 %v3893_v41  ;;  %v3965_v41 = vcombine.low %v196_v25, %v200_v26  ;;  %v4086_v45 = vcombine.high %v316_v39, %v320_v40  ;;  %v180_v46 = vld [vmem:[#allocation5 + $0x290] sm:$0xff] }
 0x11f   :  { %2834 = vmatprep.subr.bf16.mxu0 %v3886_v43  ;;  %v4093_v43 = vcombine.low %v324_v27, %v328_v29  ;;  %v184_v47 = vld [vmem:[#allocation5 + $0x2b0] sm:$0xff] }
 0x120   :  { %2874 = vmatpush1.bf16.msra.mxu1 %v4021_v42  ;;  %v492_v42 = vlaneseq  ;;  %v308_v48 = vld [vmem:[#allocation5 + $0x690] sm:$0xff]  ;;  %v3950_v53 = vcombine.high %v180_v46, %v184_v47 }
 0x121   :  { %2875 = vmatprep.subr.bf16.mxu1 %v4014_v44  ;;  %v3958_v44 = vcombine.high %v188_v36, %v192_v38  ;;  %v172_v55 = vld [vmem:[#allocation5 + $0x250] sm:$0xff] }
 0x122   :  { %2835 = vmatpush1.bf16.msra.mxu0 %v3885_v49  ;;  %v312_v49 = vld [vmem:[#allocation5 + $0x6b0] sm:$0xff] }
 0x123   :  { %2836 = vmatprep.subr.bf16.mxu0 %v3878_v51  ;;  %v4708_v51 = vshrl.u32 %v492_v42, 7  ;;  %v4078_v54 = vcombine.high %v308_v48, %v312_v49  ;;  %v176_v56 = vld [vmem:[#allocation5 + $0x270] sm:$0xff]  ;;  %v4077_v63 = vcombine.low %v308_v48, %v312_v49 }
 0x124   :  { %2876 = vmatpush1.bf16.msra.mxu1 %v4013_v50  ;;  %v3957_v50 = vcombine.low %v188_v36, %v192_v38  ;;  %v3942_v0 = vcombine.high %v172_v55, %v176_v56  ;;  %v296_v7 = vld [vmem:[#allocation5 + $0x630] sm:$0xff]  ;;  %v3941_v8 = vcombine.low %v172_v55, %v176_v56  ;;  %v157_v38 = vld [vmem:[#allocation5 + $0x1d8] sm:$0xff] }
 0x125   :  { %2877 = vmatprep.subr.bf16.mxu1 %v4006_v52  ;;  %v4085_v52 = vcombine.low %v316_v39, %v320_v40  ;;  %v416_v15 = vld [vmem:[#allocation5 + $0x9f0] sm:$0xff]  ;;  %v161_v39 = vld [vmem:[#allocation5 + $0x1f8] sm:$0xff] }
 0x126   :  { %2837 = vmatpush1.bf16.msra.mxu0 %v3877_v57  ;;  %v300_v57 = vld [vmem:[#allocation5 + $0x650] sm:$0xff] }
 0x127   :  { %2838 = vmatprep.subr.bf16.mxu0 %v3870_v61  ;;  %v3949_v61 = vcombine.low %v180_v46, %v184_v47  ;;  %v484_v18 = vld [vmem:[#allocation5 + $0xc10] sm:$0xff]  ;;  %v3928_v47 = vcombine.high %v157_v38, %v161_v39 }
 0x128   :  { %2878 = vmatpush1.bf16.msra.mxu1 %v4005_v60  ;;  %v304_v60 = vld [vmem:[#allocation5 + $0x670] sm:$0xff] }
 0x129   :  { %2879 = vmatprep.subr.bf16.mxu1 %v3998_v62  ;;  %v494_v62 = vsub.s32 0, %v4708_v51  ;;  %v4070_v2 = vcombine.high %v300_v57, %v304_v60  ;;  %v4069_v10 = vcombine.low %v300_v57, %v304_v60  ;;  %v488_v20 = vld [vmem:[#allocation5 + $0xc30] sm:$0xff]  ;;  %v149_v57 = vld [vmem:[#allocation5 + $0x198] sm:$0xff] }
 0x12a   :  { %2839 = vmatpush1.bf16.msra.mxu0 %v3869_v3  ;;  %v498_v3 = vsub.s32 1, %v4708_v51  ;;  %v396_v48 = vld [vmem:[#allocation5 + $0x950] sm:$0xff]  ;;  %v153_v60 = vld [vmem:[#allocation5 + $0x1b8] sm:$0xff] }
 0x12b   :  { %2840 = vmatprep.subr.bf16.mxu0 %v3990_v5  ;;  %v168_v5 = vld [vmem:[#allocation5 + $0x230] sm:$0xff]  ;;  %v495_v9 = vrot.slane %v4711_v1, %v494_v62 }
 0x12c   :  { %2880 = vmatpush1.bf16.msra.mxu1 %v3997_v4  ;;  %v164_v4 = vld [vmem:[#allocation5 + $0x210] sm:$0xff] }
 0x12d   :  { %2881 = vmatprep.subr.bf16.mxu1 %v4118_v6  ;;  %v292_v6 = vld [vmem:[#allocation5 + $0x610] sm:$0xff] }
 0x12e   :  { %2841 = vmatpush2.bf16.msra.mxu0 %v3989_v11  ;;  %v3934_v11 = vcombine.high %v164_v4, %v168_v5  ;;  %v4061_v25 = vcombine.low %v292_v6, %v296_v7  ;;  %v400_v49 = vld [vmem:[#allocation5 + $0x970] sm:$0xff] }
 0x12f   :  { %2842 = vmatprep.subr.bf16.mxu0 %v3982_v13  ;;  %v4062_v13 = vcombine.high %v292_v6, %v296_v7  ;;  %v388_v55 = vld [vmem:[#allocation5 + $0x910] sm:$0xff]  ;;  %v4165_v62 = vcombine.low %v396_v48, %v400_v49  ;;  %v141_v6 = vld [vmem:[#allocation5 + $0x158] sm:$0xff] }
 0x130   :  { %2882 = vmatpush2.bf16.msra.mxu1 %v4117_v12  ;;  %v499_v12 = vrot.slane %v4711_v1, %v498_v3  ;;  %v392_v56 = vld [vmem:[#allocation5 + $0x930] sm:$0xff]  ;;  %v3920_v3 = vcombine.high %v149_v57, %v153_v60  ;;  %v145_v7 = vld [vmem:[#allocation5 + $0x178] sm:$0xff] }
 0x131   :  { %2883 = vmatprep.subr.bf16.mxu1 %v4110_v14  ;;  %v412_v14 = vld [vmem:[#allocation5 + $0x9d0] sm:$0xff] }
 0x132   :  { %2843 = vmatpush2.bf16.msra.mxu0 %v3981_v21  ;;  %v4182_v26 = vcombine.high %v412_v14, %v416_v15  ;;  %v4181_v42 = vcombine.low %v412_v14, %v416_v15  ;;  %v133_v14 = vld [vmem:[#allocation5 + $0x118] sm:$0xff] }
 0x133   :  { %2844 = vmatprep.subr.bf16.mxu0 %v3974_v23  ;;  %v3933_v23 = vcombine.low %v164_v4, %v168_v5  ;;  %v380_v4 = vld [vmem:[#allocation5 + $0x8d0] sm:$0xff]  ;;  %v137_v15 = vld [vmem:[#allocation5 + $0x138] sm:$0xff] }
 0x134   :  { %2884 = vmatpush2.bf16.msra.mxu1 %v4109_v22  ;;  %v384_v5 = vld [vmem:[#allocation5 + $0x8f0] sm:$0xff] }
 0x135   :  { %2885 = vmatprep.subr.bf16.mxu1 %v4102_v24 }
 0x136   :  { %2845 = vmatpush2.bf16.msra.mxu0 %v3973_v30 }
 0x137   :  { %2846 = vmatprep.subr.bf16.mxu0 %v3966_v32  ;;  %v404_v32 = vld [vmem:[#allocation5 + $0x990] sm:$0xff] }
 0x138   :  { %2886 = vmatpush2.bf16.msra.mxu1 %v4101_v31  ;;  %v4254_v31 = vcombine.high %v484_v18, %v488_v20 }
 0x139   :  { %2887 = vmatprep.subr.bf16.mxu1 %v4094_v33  ;;  %v408_v33 = vld [vmem:[#allocation5 + $0x9b0] sm:$0xff] }
 0x13a   :  { %2847 = vmatpush2.bf16.msra.mxu0 %v3965_v41 }
 0x13b   :  { %2848 = vmatprep.subr.bf16.mxu0 %v3958_v44  ;;  %v4253_v44 = vcombine.low %v484_v18, %v488_v20  ;;  %v3911_v18 = vcombine.low %v141_v6, %v145_v7 }
 0x13c   :  { %2888 = vmatpush2.bf16.msra.mxu1 %v4093_v43 }
 0x13d   :  { %2889 = vmatprep.subr.bf16.mxu1 %v4086_v45  ;;  %v4174_v45 = vcombine.high %v404_v32, %v408_v33 }
 0x13e   :  { %2849 = vmatpush2.bf16.msra.mxu0 %v3957_v50 }
 0x13f   :  { %2850 = vmatprep.subr.bf16.mxu0 %v3950_v53  ;;  %v4166_v53 = vcombine.high %v396_v48, %v400_v49 }
 0x140   :  { %2890 = vmatpush2.bf16.msra.mxu1 %v4085_v52  ;;  %v4173_v52 = vcombine.low %v404_v32, %v408_v33  ;;  %v360_v32 = vld [vmem:[#allocation5 + $0x830] sm:$0xff]  ;;  %v117_v33 = vld [vmem:[#allocation5 + $0x98] sm:$0xff] }
 0x141   :  { %2891 = vmatprep.subr.bf16.mxu1 %v4078_v54 }
 0x142   :  { %2851 = vmatpush2.bf16.msra.mxu0 %v3949_v61 }
 0x143   :  { %2852 = vmatprep.subr.bf16.mxu0 %v3942_v0  ;;  %v4158_v0 = vcombine.high %v388_v55, %v392_v56 }
 0x144   :  { %2892 = vmatpush2.bf16.msra.mxu1 %v4077_v63  ;;  %v3927_v63 = vcombine.low %v157_v38, %v161_v39 }
 0x145   :  { %2893 = vmatprep.subr.bf16.mxu1 %v4070_v2  ;;  %v2530_v17 = vpop.f32.mrf.mxu0 }
 0x146   :  { %v2531_v21 = vadd.f32 %v2530_v17, %v495_v9  ;;  %2853 = vmatpush2.bf16.msra.mxu0 %v3941_v8  ;;  %v4157_v8 = vcombine.low %v388_v55, %v392_v56  ;;  %v3919_v9 = vcombine.low %v149_v57, %v153_v60  ;;  %v4149_v17 = vcombine.low %v380_v4, %v384_v5  ;;  %v472_v55 = vld [vmem:[#allocation5 + $0xbb0] sm:$0xff]  ;;  %v101_v56 = vld [vmem:[#allocation5 + $0x18] sm:$0xff] }
 0x147   :  { %v2571_v22 = vpop.f32.mrf.mxu1  ;;  %v2532_v24 = vpop.f32.mrf.mxu0  ;;  %2854 = vmatprep.subr.bf16.mxu0 %v3934_v11  ;;  %v3912_v11 = vcombine.high %v141_v6, %v145_v7  ;;  %v105_v57 = vld [vmem:[#allocation5 + $0x38] sm:$0xff] }
 0x148   :  { %2894 = vmatpush2.bf16.msra.mxu1 %v4069_v10  ;;  %v4716_v27 = vadd.f32 %v2571_v22, %v2531_v21  ;;  %v2533_v29 = vadd.f32 %v2532_v24, %v499_v12  ;;  %v4150_v10 = vcombine.high %v380_v4, %v384_v5  ;;  %v372_v12 = vld [vmem:[#allocation5 + $0x890] sm:$0xff]  ;;  %v3904_v21 = vcombine.high %v133_v14, %v137_v15  ;;  %v125_v24 = vld [vmem:[#allocation5 + $0xd8] sm:$0xff] }
 0x149   :  { %v2573_v30 = vpop.f32.mrf.mxu1  ;;  %2895 = vmatprep.subr.bf16.mxu1 %v4062_v13  ;;  %v2534_v36 = vpop.f32.mrf.mxu0  ;;  %v376_v13 = vld [vmem:[#allocation5 + $0x8b0] sm:$0xff]  ;;  %v225_v4 = vld [vmem:[#allocation5 + $0x3f8] sm:$0xff]  ;;  %v3871_v6 = vcombine.low %v101_v56, %v105_v57 }
 0x14a   :  { %v4718_v40 = vadd.f32 %v2573_v30, %v2533_v29  ;;  %2855 = vmatpush2.bf16.msra.mxu0 %v3933_v23  ;;  %v4142_v20 = vcombine.high %v372_v12, %v376_v13  ;;  %v364_v22 = vld [vmem:[#allocation5 + $0x850] sm:$0xff]  ;;  %v3903_v29 = vcombine.low %v133_v14, %v137_v15  ;;  %v121_v36 = vld [vmem:[#allocation5 + $0xb8] sm:$0xff] }
 0x14b   :  { %v2575_v41 = vpop.f32.mrf.mxu1  ;;  %v2535_v43 = vpop.f32.mrf.mxu0  ;;  %2906 = vmatprep.subr.bf16.mxu0 %v4182_v26  ;;  %v368_v23 = vld [vmem:[#allocation5 + $0x870] sm:$0xff]  ;;  %v4141_v26 = vcombine.low %v372_v12, %v376_v13  ;;  %v3887_v48 = vcombine.low %v117_v33, %v121_v36  ;;  %v217_v12 = vld [vmem:[#allocation5 + $0x3b8] sm:$0xff] }
 0x14c   :  { %2896 = vmatpush2.bf16.msra.mxu1 %v4061_v25  ;;  %v129_v25 = vld [vmem:[#allocation5 + $0xf8] sm:$0xff]  ;;  %v4133_v38 = vcombine.low %v364_v22, %v368_v23  ;;  %v476_v43 = vld [vmem:[#allocation5 + $0xbd0] sm:$0xff] }
 0x14d   :  { %v2576_v46 = vpop.f32.mrf.mxu1  ;;  %2961 = vmatprep.subr.bf16.mxu1 %v4254_v31  ;;  %2857 = vmatmul.mubr.bf16.vlgmr.msra.gmra.mxu0 %v4680_v16  ;;  %v3896_v30 = vcombine.high %v125_v24, %v129_v25  ;;  %v356_v31 = vld [vmem:[#allocation5 + $0x810] sm:$0xff]  ;;  %v3895_v39 = vcombine.low %v125_v24, %v129_v25 }
 0x14e   :  { %2907 = vmatpush1.bf16.msra.mxu0 %v4181_v42  ;;  %2938 = vmatprep.mubr.bf16.mxu0 %v4685_v28  ;;  %v4126_v41 = vcombine.high %v356_v31, %v360_v32  ;;  %v3888_v42 = vcombine.high %v117_v33, %v121_v36  ;;  %v113_v46 = vld [vmem:[#allocation5 + $0x78] sm:$0xff] }
 0x14f   :  { %2898 = vmatmul.mubr.bf16.vlgmr.msra.gmra.mxu1 %v4682_v19  ;;  %v4722_v50 = vpop.f32.mrf.mxu1  ;;  %2908 = vmatprep.subr.bf16.mxu0 %v4174_v45  ;;  %v109_v45 = vld [vmem:[#allocation5 + $0x58] sm:$0xff] }
 0x150   :  { %2962 = vmatpush1.bf16.msra.mxu1 %v4253_v44  ;;  %2979 = vmatprep.mubr.bf16.mxu1 %v4627_v34  ;;  %v480_v44 = vld [vmem:[#allocation5 + $0xbf0] sm:$0xff] }
 0x151   :  { %v4724_v54 = vpop.f32.mrf.mxu1  ;;  %2988 = vmatprep.subr.bf16.mxu1 %v3928_v47  ;;  %v4125_v47 = vcombine.low %v356_v31, %v360_v32  ;;  %v4246_v49 = vcombine.high %v476_v43, %v480_v44  ;;  %v4245_v60 = vcombine.low %v476_v43, %v480_v44  ;;  %v201_v31 = vld [vmem:[#allocation5 + $0x338] sm:$0xff] }
 0x152   :  { %2909 = vmatpush1.bf16.msra.mxu0 %v4173_v52  ;;  %v3880_v52 = vcombine.high %v109_v45, %v113_v46  ;;  %v193_v43 = vld [vmem:[#allocation5 + $0x2f8] sm:$0xff] }
 0x153   :  { %v2657_v61 = vpop.f32.mrf.mxu1  ;;  %2910 = vmatprep.subr.bf16.mxu0 %v4166_v53  ;;  %v468_v53 = vld [vmem:[#allocation5 + $0xb90] sm:$0xff] }
 0x154   :  { %v3879_v61 = vcombine.low %v109_v45, %v113_v46  ;;  %v4237_v5 = vcombine.low %v468_v53, %v472_v55 }
 0x155   :  { %v2658_v2 = vpop.f32.mrf.mxu1 }
 0x156   :  { %2911 = vmatpush1.bf16.msra.mxu0 %v4165_v62  ;;  %v4238_v62 = vcombine.high %v468_v53, %v472_v55  ;;  %v464_v2 = vld [vmem:[#allocation5 + $0xb70] sm:$0xff]  ;;  %v185_v53 = vld [vmem:[#allocation5 + $0x2b8] sm:$0xff] }
 0x157   :  { %4259 = vmatmul.mubr.msk.bf16.vlgmr.msra.gmra.mxu1 %vm2492_vm0, %v4690_v37  ;;  %2912 = vmatprep.subr.bf16.mxu0 %v4158_v0  ;;  %v460_v0 = vld [vmem:[#allocation5 + $0xb50] sm:$0xff] }
 0x158   :  { %2989 = vmatpush1.bf16.msra.mxu1 %v3927_v63  ;;  %3020 = vmatprep.mubr.bf16.mxu1 %v4674_v58  ;;  %v4134_v58 = vcombine.high %v364_v22, %v368_v23  ;;  %v3872_v63 = vcombine.high %v101_v56, %v105_v57  ;;  %v4230_v7 = vcombine.high %v460_v0, %v464_v2  ;;  %v209_v22 = vld [vmem:[#allocation5 + $0x378] sm:$0xff] }
 0x159   :  { %2990 = vmatprep.subr.bf16.mxu1 %v3920_v3  ;;  %v221_v3 = vld [vmem:[#allocation5 + $0x3d8] sm:$0xff]  ;;  %v4229_v13 = vcombine.low %v460_v0, %v464_v2 }
 0x15a   :  { %2913 = vmatpush1.bf16.msra.mxu0 %v4157_v8  ;;  %v3992_v8 = vcombine.high %v221_v3, %v225_v4  ;;  %v3991_v14 = vcombine.low %v221_v3, %v225_v4  ;;  %v173_v0 = vld [vmem:[#allocation5 + $0x258] sm:$0xff] }
 0x15b   :  { %2914 = vmatprep.subr.bf16.mxu0 %v4150_v10  ;;  %v456_v10 = vld [vmem:[#allocation5 + $0xb30] sm:$0xff]  ;;  %v177_v2 = vld [vmem:[#allocation5 + $0x278] sm:$0xff] }
 0x15c   :  { %2991 = vmatpush1.bf16.msra.mxu1 %v3919_v9  ;;  %v452_v9 = vld [vmem:[#allocation5 + $0xb10] sm:$0xff] }
 0x15d   :  { %2992 = vmatprep.subr.bf16.mxu1 %v3912_v11  ;;  %v213_v11 = vld [vmem:[#allocation5 + $0x398] sm:$0xff]  ;;  %v4222_v15 = vcombine.high %v452_v9, %v456_v10  ;;  %v4221_v23 = vcombine.low %v452_v9, %v456_v10  ;;  %v3944_v10 = vcombine.high %v173_v0, %v177_v2 }
 0x15e   :  { %2915 = vmatpush1.bf16.msra.mxu0 %v4149_v17  ;;  %v3984_v17 = vcombine.high %v213_v11, %v217_v12  ;;  %v3983_v24 = vcombine.low %v213_v11, %v217_v12  ;;  %v277_v11 = vld [vmem:[#allocation5 + $0x598] sm:$0xff] }
 0x15f   :  { %2916 = vmatprep.subr.bf16.mxu0 %v4142_v20  ;;  %v448_v20 = vld [vmem:[#allocation5 + $0xaf0] sm:$0xff]  ;;  %v281_v12 = vld [vmem:[#allocation5 + $0x5b8] sm:$0xff] }
 0x160   :  { %2993 = vmatpush1.bf16.msra.mxu1 %v3911_v18  ;;  %v444_v18 = vld [vmem:[#allocation5 + $0xad0] sm:$0xff] }
 0x161   :  { %2994 = vmatprep.subr.bf16.mxu1 %v3904_v21  ;;  %v205_v21 = vld [vmem:[#allocation5 + $0x358] sm:$0xff]  ;;  %v4214_v25 = vcombine.high %v444_v18, %v448_v20  ;;  %v4213_v32 = vcombine.low %v444_v18, %v448_v20  ;;  %v3943_v20 = vcombine.low %v173_v0, %v177_v2 }
 0x162   :  { %2917 = vmatpush1.bf16.msra.mxu0 %v4141_v26  ;;  %v3976_v26 = vcombine.high %v205_v21, %v209_v22  ;;  %v3975_v33 = vcombine.low %v205_v21, %v209_v22  ;;  %v273_v22 = vld [vmem:[#allocation5 + $0x578] sm:$0xff] }
 0x163   :  { %2918 = vmatprep.subr.bf16.mxu0 %v4134_v58  ;;  %v440_v58 = vld [vmem:[#allocation5 + $0xab0] sm:$0xff]  ;;  %v237_v0 = vld [vmem:[#allocation5 + $0x458] sm:$0xff] }
 0x164   :  { %2995 = vmatpush1.bf16.msra.mxu1 %v3903_v29  ;;  %v436_v29 = vld [vmem:[#allocation5 + $0xa90] sm:$0xff]  ;;  %v241_v2 = vld [vmem:[#allocation5 + $0x478] sm:$0xff] }
 0x165   :  { %2996 = vmatprep.subr.bf16.mxu1 %v3896_v30  ;;  %v197_v30 = vld [vmem:[#allocation5 + $0x318] sm:$0xff]  ;;  %v4206_v36 = vcombine.high %v436_v29, %v440_v58  ;;  %v4205_v44 = vcombine.low %v436_v29, %v440_v58 }
 0x166   :  { %2919 = vmatpush1.bf16.msra.mxu0 %v4133_v38  ;;  %v3968_v38 = vcombine.high %v197_v30, %v201_v31  ;;  %v3967_v45 = vcombine.low %v197_v30, %v201_v31  ;;  %v261_v31 = vld [vmem:[#allocation5 + $0x518] sm:$0xff] }
 0x167   :  { %2920 = vmatprep.subr.bf16.mxu0 %v4126_v41  ;;  %v432_v41 = vld [vmem:[#allocation5 + $0xa70] sm:$0xff] }
 0x168   :  { %2997 = vmatpush1.bf16.msra.mxu1 %v3895_v39  ;;  %v428_v39 = vld [vmem:[#allocation5 + $0xa50] sm:$0xff] }
 0x169   :  { %2998 = vmatprep.subr.bf16.mxu1 %v3888_v42  ;;  %v189_v42 = vld [vmem:[#allocation5 + $0x2d8] sm:$0xff]  ;;  %v4198_v46 = vcombine.high %v428_v39, %v432_v41  ;;  %v4197_v55 = vcombine.low %v428_v39, %v432_v41 }
 0x16a   :  { %2921 = vmatpush1.bf16.msra.mxu0 %v4125_v47  ;;  %v3960_v47 = vcombine.high %v189_v42, %v193_v43  ;;  %v3959_v56 = vcombine.low %v189_v42, %v193_v43 }
 0x16b   :  { %2922 = vmatprep.subr.bf16.mxu0 %v4246_v49  ;;  %v424_v49 = vld [vmem:[#allocation5 + $0xa30] sm:$0xff] }
 0x16c   :  { %2999 = vmatpush1.bf16.msra.mxu1 %v3887_v48  ;;  %v420_v48 = vld [vmem:[#allocation5 + $0xa10] sm:$0xff] }
 0x16d   :  { %3000 = vmatprep.subr.bf16.mxu1 %v3880_v52  ;;  %v181_v52 = vld [vmem:[#allocation5 + $0x298] sm:$0xff]  ;;  %v4190_v57 = vcombine.high %v420_v48, %v424_v49  ;;  %v4189_v4 = vcombine.low %v420_v48, %v424_v49 }
 0x16e   :  { %2923 = vmatpush2.bf16.msra.mxu0 %v4245_v60  ;;  %v3952_v60 = vcombine.high %v181_v52, %v185_v53 }
 0x16f   :  { %2924 = vmatprep.subr.bf16.mxu0 %v4238_v62  ;;  %v289_v62 = vld [vmem:[#allocation5 + $0x5f8] sm:$0xff] }
 0x170   :  { %3001 = vmatpush1.bf16.msra.mxu1 %v3879_v61  ;;  %v285_v61 = vld [vmem:[#allocation5 + $0x5d8] sm:$0xff] }
 0x171   :  { %3002 = vmatprep.subr.bf16.mxu1 %v3872_v63 }
 0x172   :  { %2925 = vmatpush2.bf16.msra.mxu0 %v4237_v5 }
 0x173   :  { %2926 = vmatprep.subr.bf16.mxu0 %v4230_v7  ;;  %v4056_v7 = vcombine.high %v285_v61, %v289_v62 }
 0x174   :  { %3003 = vmatpush1.bf16.msra.mxu1 %v3871_v6  ;;  %v3951_v6 = vcombine.low %v181_v52, %v185_v53 }
 0x175   :  { %3004 = vmatprep.subr.bf16.mxu1 %v3992_v8 }
 0x176   :  { %2927 = vmatpush2.bf16.msra.mxu0 %v4229_v13 }
 0x177   :  { %2928 = vmatprep.subr.bf16.mxu0 %v4222_v15  ;;  %v169_v15 = vld [vmem:[#allocation5 + $0x238] sm:$0xff] }
 0x178   :  { %3005 = vmatpush2.bf16.msra.mxu1 %v3991_v14  ;;  %v165_v14 = vld [vmem:[#allocation5 + $0x218] sm:$0xff] }
 0x179   :  { %3006 = vmatprep.subr.bf16.mxu1 %v3984_v17  ;;  %v4055_v17 = vcombine.low %v285_v61, %v289_v62  ;;  %v3936_v21 = vcombine.high %v165_v14, %v169_v15 }
 0x17a   :  { %2929 = vmatpush2.bf16.msra.mxu0 %v4221_v23  ;;  %v413_v23 = vld [vmem:[#allocation5 + $0x9d8] sm:$0xff] }
 0x17b   :  { %2930 = vmatprep.subr.bf16.mxu0 %v4214_v25 }
 0x17c   :  { %3007 = vmatpush2.bf16.msra.mxu1 %v3983_v24  ;;  %v417_v24 = vld [vmem:[#allocation5 + $0x9f8] sm:$0xff] }
 0x17d   :  { %3008 = vmatprep.subr.bf16.mxu1 %v3976_v26  ;;  %v3935_v26 = vcombine.low %v165_v14, %v169_v15  ;;  %v4184_v30 = vcombine.high %v413_v23, %v417_v24  ;;  %v4183_v41 = vcombine.low %v413_v23, %v417_v24 }
 0x17e   :  { %2931 = vmatpush2.bf16.msra.mxu0 %v4213_v32  ;;  %v265_v32 = vld [vmem:[#allocation5 + $0x538] sm:$0xff] }
 0x17f   :  { %2932 = vmatprep.subr.bf16.mxu0 %v4206_v36  ;;  %v409_v36 = vld [vmem:[#allocation5 + $0x9b8] sm:$0xff]  ;;  %v4032_v42 = vcombine.high %v261_v31, %v265_v32  ;;  %v4031_v48 = vcombine.low %v261_v31, %v265_v32 }
 0x180   :  { %3009 = vmatpush2.bf16.msra.mxu1 %v3975_v33  ;;  %v405_v33 = vld [vmem:[#allocation5 + $0x998] sm:$0xff] }
 0x181   :  { %3010 = vmatprep.subr.bf16.mxu1 %v3968_v38  ;;  %v4176_v43 = vcombine.high %v405_v33, %v409_v36  ;;  %v4175_v49 = vcombine.low %v405_v33, %v409_v36 }
 0x182   :  { %2933 = vmatpush2.bf16.msra.mxu0 %v4205_v44  ;;  %v253_v44 = vld [vmem:[#allocation5 + $0x4d8] sm:$0xff] }
 0x183   :  { %2934 = vmatprep.subr.bf16.mxu0 %v4198_v46  ;;  %v397_v46 = vld [vmem:[#allocation5 + $0x958] sm:$0xff] }
 0x184   :  { %3011 = vmatpush2.bf16.msra.mxu1 %v3967_v45  ;;  %v257_v45 = vld [vmem:[#allocation5 + $0x4f8] sm:$0xff] }
 0x185   :  { %3012 = vmatprep.subr.bf16.mxu1 %v3960_v47  ;;  %v2612_v63 = vpop.f32.mrf.mxu0  ;;  %v401_v47 = vld [vmem:[#allocation5 + $0x978] sm:$0xff]  ;;  %v4024_v52 = vcombine.high %v253_v44, %v257_v45  ;;  %v4023_v61 = vcombine.low %v253_v44, %v257_v45 }
 0x186   :  { %v2613_v3 = vadd.f32 %v2612_v63, %v4716_v27  ;;  %2935 = vmatpush2.bf16.msra.mxu0 %v4197_v55  ;;  %v4168_v53 = vcombine.high %v397_v46, %v401_v47  ;;  %v245_v55 = vld [vmem:[#allocation5 + $0x498] sm:$0xff]  ;;  %v4167_v62 = vcombine.low %v397_v46, %v401_v47 }
 0x187   :  { %v2614_v5 = vpop.f32.mrf.mxu0  ;;  %2936 = vmatprep.subr.bf16.mxu0 %v4190_v57  ;;  %v389_v57 = vld [vmem:[#allocation5 + $0x918] sm:$0xff] }
 0x188   :  { %3013 = vmatpush2.bf16.msra.mxu1 %v3959_v56  ;;  %v4733_v8 = vadd.f32 %v4722_v50, %v2613_v3  ;;  %v2615_v9 = vadd.f32 %v2614_v5, %v4718_v40  ;;  %v4048_v50 = vcombine.high %v277_v11, %v281_v12  ;;  %v269_v40 = vld [vmem:[#allocation5 + $0x558] sm:$0xff] }
 0x189   :  { %3014 = vmatprep.subr.bf16.mxu1 %v3952_v60  ;;  %v2616_v13 = vpop.f32.mrf.mxu0  ;;  %v4040_v29 = vcombine.high %v269_v40, %v273_v22  ;;  %v4039_v39 = vcombine.low %v269_v40, %v273_v22  ;;  %v249_v56 = vld [vmem:[#allocation5 + $0x4b8] sm:$0xff] }
 0x18a   :  { %v4737_v27 = vadd.f32 %v4724_v54, %v2615_v9  ;;  %2937 = vmatpush2.bf16.msra.mxu0 %v4189_v4  ;;  %v4047_v54 = vcombine.low %v277_v11, %v281_v12  ;;  %v393_v60 = vld [vmem:[#allocation5 + $0x938] sm:$0xff]  ;;  %v4015_v5 = vcombine.low %v245_v55, %v249_v56  ;;  %v4007_v13 = vcombine.low %v237_v0, %v241_v2 }
 0x18b   :  { %v2617_v18 = vpop.f32.mrf.mxu0  ;;  %3029 = vmatprep.subr.bf16.mxu0 %v4056_v7  ;;  %v4160_v63 = vcombine.high %v389_v57, %v393_v60  ;;  %v381_v3 = vld [vmem:[#allocation5 + $0x8d8] sm:$0xff] }
 0x18c   :  { %3015 = vmatpush2.bf16.msra.mxu1 %v3951_v6  ;;  %v385_v4 = vld [vmem:[#allocation5 + $0x8f8] sm:$0xff]  ;;  %v4159_v6 = vcombine.low %v389_v57, %v393_v60 }
 0x18d   :  { %3016 = vmatprep.subr.bf16.mxu1 %v3944_v10  ;;  %2939 = vmatmul.mubr.bf16.vlgmr.msra.gmra.mxu0 %v4695_v35  ;;  %v4152_v7 = vcombine.high %v381_v3, %v385_v4  ;;  %v229_v9 = vld [vmem:[#allocation5 + $0x418] sm:$0xff]  ;;  %v4151_v14 = vcombine.low %v381_v3, %v385_v4 }
 0x18e   :  { %3030 = vmatpush1.bf16.msra.mxu0 %v4055_v17  ;;  %3061 = vmatprep.mubr.bf16.mxu0 %v4676_v59  ;;  %v233_v10 = vld [vmem:[#allocation5 + $0x438] sm:$0xff] }
 0x18f   :  { %v4740_v25 = vpop.f32.mrf.mxu1  ;;  %3031 = vmatprep.subr.bf16.mxu0 %v4048_v50  ;;  %v373_v11 = vld [vmem:[#allocation5 + $0x898] sm:$0xff]  ;;  %v4000_v15 = vcombine.high %v229_v9, %v233_v10  ;;  %v3999_v40 = vcombine.low %v229_v9, %v233_v10 }
 0x190   :  { %3017 = vmatpush2.bf16.msra.mxu1 %v3943_v20  ;;  %v377_v12 = vld [vmem:[#allocation5 + $0x8b8] sm:$0xff] }
 0x191   :  { %v4743_v58 = vpop.f32.mrf.mxu1  ;;  %3018 = vmatprep.subr.bf16.mxu1 %v3936_v21  ;;  %v4144_v17 = vcombine.high %v373_v11, %v377_v12  ;;  %v349_v18 = vld [vmem:[#allocation5 + $0x7d8] sm:$0xff]  ;;  %v4143_v22 = vcombine.low %v373_v11, %v377_v12 }
 0x192   :  { %3032 = vmatpush1.bf16.msra.mxu0 %v4047_v54  ;;  %v353_v20 = vld [vmem:[#allocation5 + $0x7f8] sm:$0xff] }
 0x193   :  { %v2698_v38 = vpop.f32.mrf.mxu1  ;;  %3033 = vmatprep.subr.bf16.mxu0 %v4040_v29  ;;  %v365_v50 = vld [vmem:[#allocation5 + $0x858] sm:$0xff]  ;;  %v4120_v23 = vcombine.high %v349_v18, %v353_v20  ;;  %v4119_v31 = vcombine.low %v349_v18, %v353_v20 }
 0x194   :  { %3019 = vmatpush2.bf16.msra.mxu1 %v3935_v26  ;;  %v369_v21 = vld [vmem:[#allocation5 + $0x878] sm:$0xff] }
 0x195   :  { %v2699_v59 = vpop.f32.mrf.mxu1  ;;  %3070 = vmatprep.subr.bf16.mxu1 %v4184_v30  ;;  %v4136_v24 = vcombine.high %v365_v50, %v369_v21  ;;  %v341_v54 = vld [vmem:[#allocation5 + $0x798] sm:$0xff]  ;;  %v4135_v32 = vcombine.low %v365_v50, %v369_v21 }
 0x196   :  { %3034 = vmatpush1.bf16.msra.mxu0 %v4039_v39  ;;  %v345_v26 = vld [vmem:[#allocation5 + $0x7b8] sm:$0xff] }
 0x197   :  { %3021 = vmatmul.mubr.bf16.vlgmr.msra.gmra.mxu1 %v4680_v16  ;;  %3035 = vmatprep.subr.bf16.mxu0 %v4032_v42  ;;  %v4016_v16 = vcombine.high %v245_v55, %v249_v56  ;;  %v357_v29 = vld [vmem:[#allocation5 + $0x818] sm:$0xff]  ;;  %v4112_v33 = vcombine.high %v341_v54, %v345_v26  ;;  %v4111_v59 = vcombine.low %v341_v54, %v345_v26 }
 0x198   :  { %3071 = vmatpush1.bf16.msra.mxu1 %v4183_v41  ;;  %3102 = vmatprep.mubr.bf16.mxu1 %v4685_v28  ;;  %v4008_v28 = vcombine.high %v237_v0, %v241_v2  ;;  %v361_v30 = vld [vmem:[#allocation5 + $0x838] sm:$0xff] }
 0x199   :  { %3072 = vmatprep.subr.bf16.mxu1 %v4176_v43  ;;  %v4128_v36 = vcombine.high %v357_v29, %v361_v30  ;;  %v333_v38 = vld [vmem:[#allocation5 + $0x758] sm:$0xff]  ;;  %v4127_v43 = vcombine.low %v357_v29, %v361_v30 }
 0x19a   :  { %3036 = vmatpush1.bf16.msra.mxu0 %v4031_v48  ;;  %v337_v39 = vld [vmem:[#allocation5 + $0x778] sm:$0xff] }
 0x19b   :  { %3037 = vmatprep.subr.bf16.mxu0 %v4024_v52  ;;  %v477_v41 = vld [vmem:[#allocation5 + $0xbd8] sm:$0xff]  ;;  %v4104_v44 = vcombine.high %v333_v38, %v337_v39  ;;  %v4103_v52 = vcombine.low %v333_v38, %v337_v39 }
 0x19c   :  { %3073 = vmatpush1.bf16.msra.mxu1 %v4175_v49  ;;  %v481_v42 = vld [vmem:[#allocation5 + $0xbf8] sm:$0xff] }
 0x19d   :  { %3074 = vmatprep.subr.bf16.mxu1 %v4168_v53  ;;  %v4248_v45 = vcombine.high %v477_v41, %v481_v42  ;;  %v325_v46 = vld [vmem:[#allocation5 + $0x718] sm:$0xff]  ;;  %v4247_v53 = vcombine.low %v477_v41, %v481_v42 }
 0x19e   :  { %3038 = vmatpush1.bf16.msra.mxu0 %v4023_v61  ;;  %v329_v47 = vld [vmem:[#allocation5 + $0x738] sm:$0xff] }
 0x19f   :  { %3039 = vmatprep.subr.bf16.mxu0 %v4016_v16  ;;  %v469_v48 = vld [vmem:[#allocation5 + $0xb98] sm:$0xff]  ;;  %v4096_v55 = vcombine.high %v325_v46, %v329_v47  ;;  %v4095_v16 = vcombine.low %v325_v46, %v329_v47 }
 0x1a0   :  { %3075 = vmatpush1.bf16.msra.mxu1 %v4167_v62  ;;  %v473_v49 = vld [vmem:[#allocation5 + $0xbb8] sm:$0xff] }
 0x1a1   :  { %3076 = vmatprep.subr.bf16.mxu1 %v4160_v63  ;;  %v4240_v56 = vcombine.high %v469_v48, %v473_v49  ;;  %v317_v57 = vld [vmem:[#allocation5 + $0x6d8] sm:$0xff]  ;;  %v4239_v63 = vcombine.low %v469_v48, %v473_v49 }
 0x1a2   :  { %3040 = vmatpush1.bf16.msra.mxu0 %v4015_v5  ;;  %v321_v60 = vld [vmem:[#allocation5 + $0x6f8] sm:$0xff] }
 0x1a3   :  { %3041 = vmatprep.subr.bf16.mxu0 %v4008_v28  ;;  %v461_v61 = vld [vmem:[#allocation5 + $0xb58] sm:$0xff]  ;;  %v4088_v0 = vcombine.high %v317_v57, %v321_v60  ;;  %v4087_v28 = vcombine.low %v317_v57, %v321_v60 }
 0x1a4   :  { %3077 = vmatpush1.bf16.msra.mxu1 %v4159_v6  ;;  %v465_v62 = vld [vmem:[#allocation5 + $0xb78] sm:$0xff] }
 0x1a5   :  { %3078 = vmatprep.subr.bf16.mxu1 %v4152_v7  ;;  %v4232_v2 = vcombine.high %v461_v61, %v465_v62  ;;  %v309_v3 = vld [vmem:[#allocation5 + $0x698] sm:$0xff]  ;;  %v4231_v7 = vcombine.low %v461_v61, %v465_v62 }
 0x1a6   :  { %3042 = vmatpush1.bf16.msra.mxu0 %v4007_v13  ;;  %v313_v4 = vld [vmem:[#allocation5 + $0x6b8] sm:$0xff] }
 0x1a7   :  { %3043 = vmatprep.subr.bf16.mxu0 %v4000_v15  ;;  %v453_v5 = vld [vmem:[#allocation5 + $0xb18] sm:$0xff]  ;;  %v4080_v9 = vcombine.high %v309_v3, %v313_v4  ;;  %v4079_v15 = vcombine.low %v309_v3, %v313_v4 }
 0x1a8   :  { %3079 = vmatpush1.bf16.msra.mxu1 %v4151_v14  ;;  %v457_v6 = vld [vmem:[#allocation5 + $0xb38] sm:$0xff] }
 0x1a9   :  { %3080 = vmatprep.subr.bf16.mxu1 %v4144_v17  ;;  %v4224_v10 = vcombine.high %v453_v5, %v457_v6  ;;  %v301_v11 = vld [vmem:[#allocation5 + $0x658] sm:$0xff]  ;;  %v4223_v17 = vcombine.low %v453_v5, %v457_v6  ;;  %v4428_v5 = vld [vmem:[#allocation8 + $0xb8] sm:$0xff]  }
 0x1aa   :  { %3044 = vmatpush1.bf16.msra.mxu0 %v3999_v40  ;;  %v305_v12 = vld [vmem:[#allocation5 + $0x678] sm:$0xff] }
 0x1ab   :  { %3045 = vmatprep.subr.bf16.mxu0 %v4120_v23  ;;  %v445_v13 = vld [vmem:[#allocation5 + $0xad8] sm:$0xff]  ;;  %v4072_v18 = vcombine.high %v301_v11, %v305_v12  ;;  %v4071_v23 = vcombine.low %v301_v11, %v305_v12  ;;  %v4433_v12 = vld [vmem:[#allocation8 + $0x68] sm:$0xff]  }
 0x1ac   :  { %3081 = vmatpush1.bf16.msra.mxu1 %v4143_v22  ;;  %v449_v14 = vld [vmem:[#allocation5 + $0xaf8] sm:$0xff] }
 0x1ad   :  { %3082 = vmatprep.subr.bf16.mxu1 %v4136_v24  ;;  %v4216_v20 = vcombine.high %v445_v13, %v449_v14  ;;  %v293_v50 = vld [vmem:[#allocation5 + $0x618] sm:$0xff]  ;;  %v4215_v24 = vcombine.low %v445_v13, %v449_v14  ;;  %v4434_v13 = vld [vmem:[#allocation8 + $0xe8] sm:$0xff]  }
 0x1ae   :  { %3046 = vmatpush2.bf16.msra.mxu0 %v4119_v31  ;;  %v297_v21 = vld [vmem:[#allocation5 + $0x638] sm:$0xff]  ;;  %v506_v31 = vsub.s32 3, %v4708_v51  ;;  %v4435_v14 = vld [vmem:[#allocation8 + $0x28] sm:$0xff]  }
 0x1af   :  { %3047 = vmatprep.subr.bf16.mxu0 %v4112_v33  ;;  %v437_v40 = vld [vmem:[#allocation5 + $0xa98] sm:$0xff]  ;;  %v4064_v54 = vcombine.high %v293_v50, %v297_v21  ;;  %v4063_v38 = vcombine.low %v293_v50, %v297_v21  ;;  %v4441_v50 = vld [vmem:[#allocation8 + $0x58] sm:$0xff]  }
 0x1b0   :  { %3083 = vmatpush1.bf16.msra.mxu1 %v4135_v32  ;;  %v441_v22 = vld [vmem:[#allocation5 + $0xab8] sm:$0xff]  ;;  %v4763_v21 = vld [vmem:[#allocation7] sm:$0xff] }
 0x1b1   :  { %3084 = vmatprep.subr.bf16.mxu1 %v4128_v36  ;;  %v4208_v26 = vcombine.high %v437_v40, %v441_v22  ;;  %v485_v29 = vld [vmem:[#allocation5 + $0xc18] sm:$0xff]  ;;  %v4207_v41 = vcombine.low %v437_v40, %v441_v22  ;;  %v4442_v22 = vld [vmem:[#allocation8 + $0xd8] sm:$0xff]  }
 0x1b2   :  { %3048 = vmatpush2.bf16.msra.mxu0 %v4111_v59  ;;  %v489_v30 = vld [vmem:[#allocation5 + $0xc38] sm:$0xff] }
 0x1b3   :  { %3049 = vmatprep.subr.bf16.mxu0 %v4104_v44  ;;  %v429_v33 = vld [vmem:[#allocation5 + $0xa58] sm:$0xff]  ;;  %v4256_v42 = vcombine.high %v485_v29, %v489_v30  ;;  %v4255_v47 = vcombine.low %v485_v29, %v489_v30 }
 0x1b4   :  { %3085 = vmatpush1.bf16.msra.mxu1 %v4127_v43  ;;  %v433_v36 = vld [vmem:[#allocation5 + $0xa78] sm:$0xff]  ;;  %v507_v43 = vrot.slane %v4711_v1, %v506_v31 }
 0x1b5   :  { %3086 = vmatprep.subr.bf16.mxu1 %v4248_v45  ;;  %v4200_v59 = vcombine.high %v429_v33, %v433_v36  ;;  %v421_v45 = vld [vmem:[#allocation5 + $0xa18] sm:$0xff]  ;;  %v4199_v49 = vcombine.low %v429_v33, %v433_v36  ;;  %v4449_v36 = vld [vmem:[#allocation8 + $0x48] sm:$0xff]  }
 0x1b6   :  { %3050 = vmatpush2.bf16.msra.mxu0 %v4103_v52  ;;  %v425_v46 = vld [vmem:[#allocation5 + $0xa38] sm:$0xff]  ;;  %v4425_v52 = vld [vmem:[#allocation8 + $0x78] sm:$0xff]  }
 0x1b7   :  { %3051 = vmatprep.subr.bf16.mxu0 %v4096_v55  ;;  %v2697_v55 = vadd.f32 %v4743_v58, %v507_v43  ;;  %v4191_v61 = vcombine.low %v421_v45, %v425_v46  ;;  %v4432_v11 = vld [vmem:[#allocation8 + $0xb0] sm:$0xff]   ;;  %v4455_v43 = vld [vmem:[#allocation8] sm:$0xff]  }
 0x1b8   :  { %3087 = vmatpush2.bf16.msra.mxu1 %v4247_v53  ;;  %v4192_v53 = vcombine.high %v421_v45, %v425_v46  ;;  %v4446_v29 = vld [vmem:[#allocation8 + $0xd0] sm:$0xff]   ;;  %v4456_v45 = vld [vmem:[#allocation8 + $0x80] sm:$0xff]   ;;  %v4457_v46 = vld [vmem:[#allocation8 + $0x178] sm:$0xff]  }
 0x1b9   :  { %3088 = vmatprep.subr.bf16.mxu1 %v4240_v56  ;;  %v4447_v31 = vld [vmem:[#allocation8 + $0x10] sm:$0xff]  }
 0x1ba   :  { %3052 = vmatpush2.bf16.msra.mxu0 %v4095_v16  ;;  %v4426_v16 = vld [vmem:[#allocation8 + $0xf8] sm:$0xff]   ;;  %v4448_v33 = vld [vmem:[#allocation8 + $0x90] sm:$0xff]  }
 0x1bb   :  { %3053 = vmatprep.subr.bf16.mxu0 %v4088_v0 }
 0x1bc   :  { %3089 = vmatpush2.bf16.msra.mxu1 %v4239_v63  ;;  %v3153_v63 = vmax.f32 %v4737_v27, 0.0  ;;  %v4431_v27 = vld [vmem:[#allocation8 + $0x30] sm:$0xff]  }
 0x1bd   :  { %3090 = vmatprep.subr.bf16.mxu1 %v4232_v2  ;;  %v4427_v2 = vld [vmem:[#allocation8 + $0x38] sm:$0xff]  }
 0x1be   :  { %3054 = vmatpush2.bf16.msra.mxu0 %v4087_v28  ;;  %v4430_v28 = vld [vmem:[#allocation8 + $0xf0] sm:$0xff]  }
 0x1bf   :  { %3055 = vmatprep.subr.bf16.mxu0 %v4080_v9 }
 0x1c0   :  { %3091 = vmatpush2.bf16.msra.mxu1 %v4231_v7  ;;  %v3161_v7 = vpack.c.bf16 %v3153_v63, %v3153_v63  ;;  %v4478_v63 = vld [vmem:[#allocation8 + $0x1a8] sm:$0xff]  }
 0x1c1   :  { %3092 = vmatprep.subr.bf16.mxu1 %v4224_v10 }
 0x1c2   :  { %3056 = vmatpush2.bf16.msra.mxu0 %v4079_v15  ;;  %v4436_v15 = vld [vmem:[#allocation8 + $0xa8] sm:$0xff]  }
 0x1c3   :  { %3057 = vmatprep.subr.bf16.mxu0 %v4072_v18  ;;  %v4439_v18 = vld [vmem:[#allocation8 + $0x20] sm:$0xff]  }
 0x1c4   :  { %3093 = vmatpush2.bf16.msra.mxu1 %v4223_v17  ;;  %v4437_v17 = vld [vmem:[#allocation8 + $0x60] sm:$0xff]  }
 0x1c5   :  { %3094 = vmatprep.subr.bf16.mxu1 %v4216_v20  ;;  %v4748_v32 = vpop.f32.mrf.mxu0  ;;  %v4440_v20 = vld [vmem:[#allocation8 + $0xa0] sm:$0xff]  }
 0x1c6   :  { %3058 = vmatpush2.bf16.msra.mxu0 %v4071_v23  ;;  %v4443_v23 = vld [vmem:[#allocation8 + $0x18] sm:$0xff]  }
 0x1c7   :  { %v2737_v39 = vpop.f32.mrf.mxu0  ;;  %3059 = vmatprep.subr.bf16.mxu0 %v4064_v54  ;;  %v4445_v54 = vld [vmem:[#allocation8 + $0x50] sm:$0xff]  }
 0x1c8   :  { %3095 = vmatpush2.bf16.msra.mxu1 %v4215_v24  ;;  %v2738_v1 = vadd.f32 %v2737_v39, %v2697_v55  ;;  %v4444_v24 = vld [vmem:[#allocation8 + $0x98] sm:$0xff]   ;;  %v4450_v39 = vld [vmem:[#allocation8 + $0xc8] sm:$0xff]  }
 0x1c9   :  { %3096 = vmatprep.subr.bf16.mxu1 %v4208_v26  ;;  %v2739_v44 = vpop.f32.mrf.mxu0  ;;  %v4474_v55 = vld [vmem:[#allocation8 + $0x1b8] sm:$0xff]  }
 0x1ca   :  { %3060 = vmatpush2.bf16.msra.mxu0 %v4063_v38  ;;  %v3152_v44 = vmax.f32 %v4733_v8, 0.0  ;;  %v4460_v8 = vld [vmem:[#allocation8 + $0x130] sm:$0xff]  }
 0x1cb   :  { %v2740_v48 = vpop.f32.mrf.mxu0  ;;  %3125 = vmatprep.subr.bf16.mxu0 %v4256_v42  ;;  %v4452_v42 = vld [vmem:[#allocation8 + $0x88] sm:$0xff]  }
 0x1cc   :  { %3097 = vmatpush2.bf16.msra.mxu1 %v4207_v41  ;;  %v4451_v41 = vld [vmem:[#allocation8 + $0x8] sm:$0xff]   ;;  %v4473_v48 = vld [vmem:[#allocation8 + $0x1f8] sm:$0xff]  }
 0x1cd   :  { %3098 = vmatprep.subr.bf16.mxu1 %v4200_v59  ;;  %3062 = vmatmul.mubr.bf16.vlgmr.msra.gmra.mxu0 %v4682_v19  ;;  %v4753_v56 = vpop.f32.mrf.mxu0 }
 0x1ce   :  { %3126 = vmatpush1.bf16.msra.mxu0 %v4255_v47  ;;  %3143 = vmatprep.mubr.bf16.mxu0 %v4627_v34  ;;  %v4429_v34 = vld [vmem:[#allocation8 + $0x70] sm:$0xff]  }
 0x1cf   :  { %v4755_v57 = vpop.f32.mrf.mxu1  ;;  %v2819_v60 = vpop.f32.mrf.mxu0  ;;  %4326 = vmatprep.subr.bf16.mxu0 %v4425_v52  ;;  %v3160_v52 = vpack.c.bf16 %v3152_v44, %v3152_v44 }
 0x1d0   :  { %3099 = vmatpush2.bf16.msra.mxu1 %v4199_v49  ;;  %v4458_v49 = vld [vmem:[#allocation8 + $0x138] sm:$0xff]  }
 0x1d1   :  { %v2778_v62 = vpop.f32.mrf.mxu1  ;;  %3100 = vmatprep.subr.bf16.mxu1 %v4192_v53  ;;  %v2821_v0 = vpop.f32.mrf.mxu0  ;;  %v4459_v53 = vld [vmem:[#allocation8 + $0x170] sm:$0xff]  }
 0x1d2   :  { %v2779_v58 = vadd.f32 %v2778_v62, %v2738_v1  ;;  %v4461_v1 = vld [vmem:[#allocation8 + $0x168] sm:$0xff]   ;;  %v4464_v0 = vld [vmem:[#allocation8 + $0x120] sm:$0xff]  }
 0x1d3   :  { %v2780_v19 = vpop.f32.mrf.mxu1  ;;  %v2822_v4 = vpop.f32.mrf.mxu0  ;;  %v4462_v62 = vld [vmem:[#allocation8 + $0x128] sm:$0xff]  }
 0x1d4   :  { %v2820_v3 = vadd.f32 %v2819_v60, %v2779_v58  ;;  %3101 = vmatpush2.bf16.msra.mxu1 %v4191_v61  ;;  %v4476_v60 = vld [vmem:[#allocation8 + $0x1b0] sm:$0xff]   ;;  %v4477_v61 = vld [vmem:[#allocation8 + $0x1e8] sm:$0xff]   ;;  %v4479_v58 = vld [vmem:[#allocation8 + $0x1e0] sm:$0xff]  }
 0x1d5   :  { %v2781_v6 = vpop.f32.mrf.mxu1  ;;  %4348 = vmatprep.subr.bf16.mxu1 %v4426_v16  ;;  %4260 = vmatmul.mubr.msk.bf16.vlgmr.msra.gmra.mxu0 %vm2492_vm0, %v4690_v37  ;;  %v502_v37 = vsub.s32 2, %v4708_v51  ;;  %v4463_v16 = vld [vmem:[#allocation8 + $0x160] sm:$0xff]   ;;  %v4465_v19 = vld [vmem:[#allocation8 + $0x158] sm:$0xff]   ;;  %v4468_v4 = vld [vmem:[#allocation8 + $0x110] sm:$0xff]  }
 0x1d6   :  { %v3155_v9 = vmax.f32 %v2820_v3, 0.0  ;;  %4327 = vmatpush3.bf16.msra.mxu0 %v4427_v2  ;;  %3719 = vmatprep.mubr.bf16.mxu0 %v3161_v7  ;;  %v4466_v2 = vld [vmem:[#allocation8 + $0x118] sm:$0xff]   ;;  %v4467_v3 = vld [vmem:[#allocation8 + $0x150] sm:$0xff]   ;;  %v4470_v6 = vld [vmem:[#allocation8 + $0x108] sm:$0xff]  }
 0x1d7   :  { %3103 = vmatmul.mubr.bf16.vlgmr.msra.gmra.mxu1 %v4695_v35  ;;  %4328 = vmatprep.subr.bf16.mxu0 %v4429_v34  ;;  %v4438_v35 = vld [vmem:[#allocation8 + $0xe0] sm:$0xff]   ;;  %v503_v40 = vrot.slane %v4763_v21, %v502_v37 }
 0x1d8   :  { %v3163_v10 = vpack.c.bf16 %v3155_v9, %v3155_v9  ;;  %4349 = vmatpush3.bf16.msra.mxu1 %v4428_v5  ;;  %v4469_v5 = vld [vmem:[#allocation8 + $0x148] sm:$0xff]   ;;  %v4471_v34 = vld [vmem:[#allocation8 + $0x140] sm:$0xff]  }
 0x1d9   :  { %4350 = vmatprep.subr.bf16.mxu1 %v4430_v28  ;;  %v2695_v26 = vadd.f32 %v4740_v25, %v503_v40  ;;  %v4453_v25 = vld [vmem:[#allocation8 + $0x40] sm:$0xff]   ;;  %v4485_v40 = vld [vmem:[#allocation8 + $0x1c8] sm:$0xff]  }
 0x1da   :  { %3759 = vmatprep.mubr.bf16.mxu1 %v3163_v10  ;;  %4329 = vmatpush3.bf16.msra.mxu0 %v4431_v27  ;;  %v4480_v7 = vld [vmem:[#allocation8 + $0x1a0] sm:$0xff]  }
 0x1db   :  { %4330 = vmatprep.subr.bf16.mxu0 %v4433_v12  ;;  %v2736_v30 = vadd.f32 %v4748_v32, %v2695_v26  ;;  %v4454_v32 = vld [vmem:[#allocation8 + $0xc0] sm:$0xff]   ;;  %v4481_v12 = vld [vmem:[#allocation8 + $0x1d8] sm:$0xff]  }
 0x1dc   :  { %4351 = vmatpush3.bf16.msra.mxu1 %v4432_v11  ;;  %v4472_v27 = vld [vmem:[#allocation8 + $0x100] sm:$0xff]  }
 0x1dd   :  { %4352 = vmatprep.subr.bf16.mxu1 %v4434_v13  ;;  %v2777_v38 = vadd.f32 %v4755_v57, %v2736_v30  ;;  %v4475_v57 = vld [vmem:[#allocation8 + $0x1f0] sm:$0xff]   ;;  %v4488_v26 = vld [vmem:[#allocation8 + $0x180] sm:$0xff]   ;;  %v514_v30 = vsub.s32 5, %v4708_v51 }
 0x1de   :  { %4331 = vmatpush3.bf16.msra.mxu0 %v4435_v14  ;;  %v4482_v14 = vld [vmem:[#allocation8 + $0x198] sm:$0xff]  }
 0x1df   :  { %4332 = vmatprep.subr.bf16.mxu0 %v4437_v17  ;;  %v2818_v59 = vadd.f32 %v4753_v56, %v2777_v38 }
 0x1e0   :  { %4353 = vmatpush3.bf16.msra.mxu1 %v4436_v15 }
 0x1e1   :  { %4354 = vmatprep.subr.bf16.mxu1 %v4438_v35  ;;  %v3154_v47 = vmax.f32 %v2818_v59, 0.0  ;;  %v4483_v35 = vld [vmem:[#allocation8 + $0x1d0] sm:$0xff]  }
 0x1e2   :  { %4333 = vmatpush3.bf16.msra.mxu0 %v4439_v18  ;;  %v4484_v18 = vld [vmem:[#allocation8 + $0x190] sm:$0xff]  }
 0x1e3   :  { %4334 = vmatprep.subr.bf16.mxu0 %v4441_v50  ;;  %v3162_v56 = vpack.c.bf16 %v3154_v47, %v3154_v47 }
 0x1e4   :  { %4355 = vmatpush3.bf16.msra.mxu1 %v4440_v20 }
 0x1e5   :  { %4356 = vmatprep.subr.bf16.mxu1 %v4442_v22  ;;  %v4486_v22 = vld [vmem:[#allocation8 + $0x188] sm:$0xff]  }
 0x1e6   :  { %4335 = vmatpush3.bf16.msra.mxu0 %v4443_v23 }
 0x1e7   :  { %4336 = vmatprep.subr.bf16.mxu0 %v4445_v54  ;;  %v4487_v54 = vld [vmem:[#allocation8 + $0x1c0] sm:$0xff]  }
 0x1e8   :  { %4357 = vmatpush3.bf16.msra.mxu1 %v4444_v24 }
 0x1e9   :  { %4358 = vmatprep.subr.bf16.mxu1 %v4446_v29  ;;  %v510_v29 = vsub.s32 4, %v4708_v51 }
 0x1ea   :  { %4337 = vmatpush3.bf16.msra.mxu0 %v4447_v31 }
 0x1eb   :  { %4338 = vmatprep.subr.bf16.mxu0 %v4449_v36  ;;  %v511_v31 = vrot.slane %v4763_v21, %v510_v29 }
 0x1ec   :  { %4359 = vmatpush3.bf16.msra.mxu1 %v4448_v33  ;;  %v515_v33 = vrot.slane %v4763_v21, %v514_v30 }
 0x1ed   :  { %4360 = vmatprep.subr.bf16.mxu1 %v4450_v39 }
 0x1ee   :  { %4339 = vmatpush3.bf16.msra.mxu0 %v4451_v41 }
 0x1ef   :  { %4340 = vmatprep.subr.bf16.mxu0 %v4453_v25 }
 0x1f0   :  { %4361 = vmatpush3.bf16.msra.mxu1 %v4452_v42 }
 0x1f1   :  { %4362 = vmatprep.subr.bf16.mxu1 %v4454_v32 }
 0x1f2   :  { %4341 = vmatpush3.bf16.msra.mxu0 %v4455_v43 }
 0x1f3   :  { %4370 = vmatprep.subr.bf16.mxu0 %v4457_v46 }
 0x1f4   :  { %4363 = vmatpush3.bf16.msra.mxu1 %v4456_v45 }
 0x1f5   :  { %4392 = vmatprep.subr.bf16.mxu1 %v4473_v48  ;;  %3720 = vmatmul.mubr.bf16.vlgmr.msra.gmra.mxu0 %v3160_v52 }
 0x1f6   :  { %4371 = vmatpush3.bf16.msra.mxu0 %v4458_v49 }
 0x1f7   :  { %3760 = vmatmul.mubr.bf16.vlgmr.msra.gmra.mxu1 %v3162_v56  ;;  %4372 = vmatprep.subr.bf16.mxu0 %v4459_v53 }
 0x1f8   :  { %4393 = vmatpush3.bf16.msra.mxu1 %v4474_v55 }
 0x1f9   :  { %4394 = vmatprep.subr.bf16.mxu1 %v4475_v57 }
 0x1fa   :  { %4373 = vmatpush3.bf16.msra.mxu0 %v4460_v8  ;;  %v518_v8 = vsub.s32 6, %v4708_v51 }
 0x1fb   :  { %4374 = vmatprep.subr.bf16.mxu0 %v4461_v1  ;;  %v522_v1 = vsub.s32 7, %v4708_v51 }
 0x1fc   :  { %4395 = vmatpush3.bf16.msra.mxu1 %v4476_v60 }
 0x1fd   :  { %4396 = vmatprep.subr.bf16.mxu1 %v4477_v61  ;;  %v519_v61 = vrot.slane %v4763_v21, %v518_v8 }
 0x1fe   :  { %4375 = vmatpush3.bf16.msra.mxu0 %v4462_v62 }
 0x1ff   :  { %4376 = vmatprep.subr.bf16.mxu0 %v4463_v16  ;;  %v523_v16 = vrot.slane %v4763_v21, %v522_v1 }
 0x200   :  { %4397 = vmatpush3.bf16.msra.mxu1 %v4478_v63 }
 0x201   :  { %4398 = vmatprep.subr.bf16.mxu1 %v4479_v58 }
 0x202   :  { %4377 = vmatpush3.bf16.msra.mxu0 %v4464_v0 }
 0x203   :  { %4378 = vmatprep.subr.bf16.mxu0 %v4465_v19 }
 0x204   :  { %4399 = vmatpush3.bf16.msra.mxu1 %v4480_v7 }
 0x205   :  { %4400 = vmatprep.subr.bf16.mxu1 %v4481_v12 }
 0x206   :  { %4379 = vmatpush3.bf16.msra.mxu0 %v4466_v2 }
 0x207   :  { %4380 = vmatprep.subr.bf16.mxu0 %v4467_v3 }
 0x208   :  { %4401 = vmatpush3.bf16.msra.mxu1 %v4482_v14 }
 0x209   :  { %4402 = vmatprep.subr.bf16.mxu1 %v4483_v35  ;;  %v4261_v35 = vld [vmem:[#allocation10] ss:$0 sm:$0xff] }
 0x20a   :  { %4381 = vmatpush3.bf16.msra.mxu0 %v4468_v4 }
 0x20b   :  { %4382 = vmatprep.subr.bf16.mxu0 %v4469_v5 }
 0x20c   :  { %4403 = vmatpush3.bf16.msra.mxu1 %v4484_v18 }
 0x20d   :  { %v2858_v28 = vpop.f32.mrf.mxu0  ;;  %4404 = vmatprep.subr.bf16.mxu1 %v4485_v40 }
 0x20e   :  { %4383 = vmatpush3.bf16.msra.mxu0 %v4470_v6  ;;  %v2859_v36 = vadd.f32 %v2858_v28, %v511_v31 }
 0x20f   :  { %v2899_v9 = vpop.f32.mrf.mxu1  ;;  %v2860_v10 = vpop.f32.mrf.mxu0  ;;  %4384 = vmatprep.subr.bf16.mxu0 %v4471_v34 }
 0x210   :  { %4405 = vmatpush3.bf16.msra.mxu1 %v4486_v22  ;;  %v2861_v38 = vadd.f32 %v2860_v10, %v515_v33  ;;  %v2900_v39 = vadd.f32 %v2899_v9, %v2859_v36 }
 0x211   :  { %v2901_v11 = vpop.f32.mrf.mxu1  ;;  %v2862_v13 = vpop.f32.mrf.mxu0  ;;  %4406 = vmatprep.subr.bf16.mxu1 %v4487_v54 }
 0x212   :  { %4385 = vmatpush3.bf16.msra.mxu0 %v4472_v27  ;;  %v2902_v42 = vadd.f32 %v2901_v11, %v2861_v38 }
 0x213   :  { %v2903_v15 = vpop.f32.mrf.mxu1  ;;  %v2863_v17 = vpop.f32.mrf.mxu0 }
 0x214   :  { %4407 = vmatpush3.bf16.msra.mxu1 %v4488_v26 }
 0x215   :  { %v2904_v37 = vpop.f32.mrf.mxu1 }
 0x217   :  { %v2981_v20 = vpop.f32.mrf.mxu1 }
 0x219   :  { %v2983_v50 = vpop.f32.mrf.mxu1 }
 0x21b   :  { %v2985_v23 = vpop.f32.mrf.mxu1 }
 0x21d   :  { %v2986_v24 = vpop.f32.mrf.mxu1 }
 0x24d   :  { %v2940_v41 = vpop.f32.mrf.mxu0 }
 0x24e   :  { %v2941_v25 = vadd.f32 %v2940_v41, %v2900_v39 }
 0x24f   :  { %v2942_v59 = vpop.f32.mrf.mxu0 }
 0x250   :  { %v2982_v32 = vadd.f32 %v2981_v20, %v2941_v25  ;;  %v2943_v43 = vadd.f32 %v2942_v59, %v2902_v42 }
 0x251   :  { %v2944_v44 = vpop.f32.mrf.mxu0 }
 0x252   :  { %v2984_v45 = vadd.f32 %v2983_v50, %v2943_v43  ;;  %v3156_v46 = vmax.f32 %v2982_v32, 0.0 }
 0x253   :  { %v2945_v47 = vpop.f32.mrf.mxu0 }
 0x254   :  { %v3157_v48 = vmax.f32 %v2984_v45, 0.0  ;;  %v3164_v53 = vpack.c.bf16 %v3156_v46, %v3156_v46 }
 0x256   :  { %v3165_v49 = vpack.c.bf16 %v3157_v48, %v3157_v48 }
 0x257   :  { %v3022_v52 = vpop.f32.mrf.mxu1 }
 0x258   :  { %3799 = vmatprep.mubr.bf16.mxu0 %v3165_v49  ;;  %v3023_v58 = vadd.f32 %v3022_v52, %v519_v61 }
 0x259   :  { %v3024_v55 = vpop.f32.mrf.mxu1  ;;  %3800 = vmatmul.mubr.bf16.vlgmr.msra.gmra.mxu0 %v3164_v53 }
 0x25a   :  { %v3025_v19 = vadd.f32 %v3024_v55, %v523_v16 }
 0x25b   :  { %v3026_v56 = vpop.f32.mrf.mxu1 }
 0x25d   :  { %v3027_v57 = vpop.f32.mrf.mxu1 }
 0x28d   :  { %v3063_v60 = vpop.f32.mrf.mxu0 }
 0x28e   :  { %v3064_v2 = vadd.f32 %v3063_v60, %v3023_v58 }
 0x28f   :  { %v3065_v62 = vpop.f32.mrf.mxu0 }
 0x290   :  { %v3066_v5 = vadd.f32 %v3065_v62, %v3025_v19 }
 0x291   :  { %v3067_v63 = vpop.f32.mrf.mxu0 }
 0x293   :  { %v3068_v0 = vpop.f32.mrf.mxu0 }
 0x295   :  { %v3145_v3 = vpop.f32.mrf.mxu0 }
 0x297   :  { %v3104_v4 = vpop.f32.mrf.mxu1  ;;  %v3147_v34 = vpop.f32.mrf.mxu0 }
 0x298   :  { %v3105_v6 = vadd.f32 %v3104_v4, %v3064_v2 }
 0x299   :  { %v3106_v28 = vpop.f32.mrf.mxu1  ;;  %v3149_v51 = vpop.f32.mrf.mxu0 }
 0x29a   :  { %v3146_v7 = vadd.f32 %v3145_v3, %v3105_v6  ;;  %v3107_v9 = vadd.f32 %v3106_v28, %v3066_v5 }
 0x29b   :  { %v3108_v27 = vpop.f32.mrf.mxu1  ;;  %v3150_v11 = vpop.f32.mrf.mxu0 }
 0x29c   :  { %v3148_v10 = vadd.f32 %v3147_v34, %v3107_v9  ;;  %v3158_v12 = vmax.f32 %v3146_v7, 0.0 }
 0x29d   :  { %v3109_v13 = vpop.f32.mrf.mxu1 }
 0x29e   :  { %v3159_v21 = vmax.f32 %v3148_v10, 0.0  ;;  %v3166_v15 = vpack.c.bf16 %v3158_v12, %v3158_v12 }
 0x2a0   :  { %v3167_v14 = vpack.c.bf16 %v3159_v21, %v3159_v21 }
 0x2a2   :  { %3839 = vmatprep.mubr.bf16.mxu1 %v3167_v14 }
 0x2a3   :  { %3840 = vmatmul.mubr.bf16.vlgmr.msra.gmra.mxu1 %v3166_v15 }
 0x2b5   :  { %v4342_v17 = vpop.f32.mrf.mxu0 }
 0x2b7   :  { %v4364_v37 = vpop.f32.mrf.mxu1  ;;  %v4343_v18 = vpop.f32.mrf.mxu0 }
 0x2b8   :  { %v4344_v20 = vadd.f32 %v4343_v18, %v4342_v17 }
 0x2b9   :  { %v4365_v50 = vpop.f32.mrf.mxu1  ;;  %v4345_v22 = vpop.f32.mrf.mxu0 }
 0x2ba   :  { %v4366_v40 = vadd.f32 %v4365_v50, %v4364_v37  ;;  %v3722_v23 = vadd.f32 %v4344_v20, %v4261_v35 }
 0x2bb   :  { %v4367_v24 = vpop.f32.mrf.mxu1  ;;  %v4346_v54 = vpop.f32.mrf.mxu0 }
 0x2bc   :  { %v3762_v26 = vadd.f32 %v4366_v40, %v3722_v23 }
 0x2bd   :  { %v4368_v29 = vpop.f32.mrf.mxu1 }
 0x319   :  { %v4386_v30 = vpop.f32.mrf.mxu0 }
 0x31b   :  { %v4387_v31 = vpop.f32.mrf.mxu0 }
 0x31c   :  { %v4388_v33 = vadd.f32 %v4387_v31, %v4386_v30 }
 0x31d   :  { %v4389_v36 = vpop.f32.mrf.mxu0 }
 0x31e   :  { %v3802_v38 = vadd.f32 %v4388_v33, %v3762_v26 }
 0x31f   :  { %v4390_v39 = vpop.f32.mrf.mxu0 }
 0x363   :  { %v4408_v41 = vpop.f32.mrf.mxu1 }
 0x365   :  { %v4409_v42 = vpop.f32.mrf.mxu1 }
 0x366   :  { %v4410_v25 = vadd.f32 %v4409_v42, %v4408_v41 }
 0x367   :  { %v4411_v59 = vpop.f32.mrf.mxu1 }
 0x368   :  { %v3842_v32 = vadd.f32 %v4410_v25, %v3802_v38 }
 0x369   :  { %v4412_v43 = vpop.f32.mrf.mxu1 }
 0x36a   :  { %3847 = vst [vmem:[#allocation11] sm:$0xff] %v3842_v32 }
 0x36b   :  { %4601 = shalt.err (!%p4598_p1)
}
 0x36c   :  { %3857 = dma.vmem_to_hbm [thread:$0]  %s3855_s4, 128, %s4787_s5, [#allocation4]  }
 0x36d   :  { %4616 = dma.done.wait [#allocation4], 128  }
 0x36e   :  { %4617 = vsyncadd [#allocation4], 4294967168 }
 0x36f   :  { %3861 = vsyncpa [#allocation3], 1 }
 0x370   :  { %3862 = vsyncpa [#allocation6], 1 }
 0x371   :  { %3863 = vsyncpa [#allocation9], 1 }
 0x372   :  { %3864 = vsyncpa [#allocation4], 1 }

</bundles_post_ra>
